<compile_context>
chip_gen: v6e
topology: v6e:2x2x1
jax: 0.10.0
libtpu: 0.0.40
codegen_flags: <defaults>
</compile_context>

<pallas_src>
import functools

import jax
import jax.numpy as jnp
from jax.experimental import pallas as pl
from jax.experimental.pallas import tpu as pltpu


def _round_up(n, m):
    return ((n + m - 1) // m) * m


# --------------------------------------------------------------------------- #
# Generic tiled matmul-with-bias kernel:  out = A @ B + bias                   #
# --------------------------------------------------------------------------- #
def _matmul_bias_kernel(a_ref, b_ref, bias_ref, o_ref, acc_ref):
    @pl.when(pl.program_id(2) == 0)
    def _():
        acc_ref[...] = jnp.zeros_like(acc_ref)

    acc_ref[...] += jnp.dot(a_ref[...], b_ref[...],
                            preferred_element_type=jnp.float32)

    @pl.when(pl.program_id(2) == pl.num_programs(2) - 1)
    def _():
        o_ref[...] = (acc_ref[...] + bias_ref[...]).astype(o_ref.dtype)


def pallas_matmul_bias(a, b, bias, *, tm=128, tn=256, tk=256,
                       out_dtype=jnp.float32):
    """a: [M, K], b: [K, N], bias: [1, N] (f32).  Returns [M, N] in out_dtype."""
    M, K = a.shape
    Kb, N = b.shape
    assert K == Kb, (K, Kb)

    tm = min(tm, _round_up(M, 8))
    tn = min(tn, _round_up(N, 128))
    tk = min(tk, _round_up(K, 128))
    Mp, Np, Kp = _round_up(M, tm), _round_up(N, tn), _round_up(K, tk)

    a_p = jnp.pad(a, ((0, Mp - M), (0, Kp - K)))
    b_p = jnp.pad(b, ((0, Kp - K), (0, Np - N)))
    bias_p = jnp.pad(bias.reshape(1, N).astype(jnp.float32),
                     ((0, 0), (0, Np - N)))

    out = pl.pallas_call(
        _matmul_bias_kernel,
        out_shape=jax.ShapeDtypeStruct((Mp, Np), out_dtype),
        grid_spec=pltpu.PrefetchScalarGridSpec(
            num_scalar_prefetch=0,
            grid=(Mp // tm, Np // tn, Kp // tk),
            in_specs=[
                pl.BlockSpec((tm, tk), lambda i, j, k: (i, k)),
                pl.BlockSpec((tk, tn), lambda i, j, k: (k, j)),
                pl.BlockSpec((1, tn), lambda i, j, k: (0, j)),
            ],
            out_specs=pl.BlockSpec((tm, tn), lambda i, j, k: (i, j)),
            scratch_shapes=[pltpu.VMEM((tm, tn), jnp.float32)],
        ),
        compiler_params=pltpu.CompilerParams(
            dimension_semantics=("parallel", "parallel", "arbitrary"),
            vmem_limit_bytes=32 * 1024 * 1024,
        ),
    )(a_p, b_p, bias_p)
    return out[:M, :N]


# --------------------------------------------------------------------------- #
# Recurrent 2-layer LSTM cell kernel (grid over T; streams gates in / h1 out)  #
# --------------------------------------------------------------------------- #
def _lstm_recurrent_kernel(gx0_ref, whh0_ref, wih1_ref, whh1_ref, b1_ref,
                           h1_out_ref, h0, c0, h1, c1):
    """Per grid step t:
       gx0_ref:  [1, Bp, 4H] f32  precomputed x_t @ W_ih0 + (b_ih0+b_hh0)
       whh*/wih1: [H, 4H]    bf16 (pre-transposed)
       b1_ref:   [1, 4H]     f32
       h1_out:   [1, Bp, H]  bf16
       h*/c*:    [Bp, H]     f32 VMEM scratch, persistent across grid steps.
    """
    H = h0.shape[1]

    # zero initial state (PyTorch default when no (h0, c0) is passed) -- once.
    @pl.when(pl.program_id(0) == 0)
    def _():
        h0[...] = jnp.zeros_like(h0)
        c0[...] = jnp.zeros_like(c0)
        h1[...] = jnp.zeros_like(h1)
        c1[...] = jnp.zeros_like(c1)

    def gates_to_hc(gates, c_prev):
        # PyTorch gate order [i | f | g | o]; slices are lane-aligned for H % 128 == 0.
        i = jax.nn.sigmoid(gates[:, 0 * H:1 * H])
        f = jax.nn.sigmoid(gates[:, 1 * H:2 * H])
        g = jnp.tanh(gates[:, 2 * H:3 * H])
        o = jax.nn.sigmoid(gates[:, 3 * H:4 * H])
        c_new = f * c_prev + i * g
        h_new = o * jnp.tanh(c_new)
        return h_new, c_new

    # layer 0: only the recurrent term remains inside the loop.
    gates0 = gx0_ref[0] + jnp.dot(h0[...].astype(jnp.bfloat16), whh0_ref[...],
                                  preferred_element_type=jnp.float32)
    h0_new, c0_new = gates_to_hc(gates0, c0[...])
    h0[...] = h0_new
    c0[...] = c0_new

    # layer 1 (input = layer 0's hidden at this timestep).
    gates1 = (jnp.dot(h0_new.astype(jnp.bfloat16), wih1_ref[...],
                      preferred_element_type=jnp.float32)
              + jnp.dot(h1[...].astype(jnp.bfloat16), whh1_ref[...],
                        preferred_element_type=jnp.float32)
              + b1_ref[...])
    h1_new, c1_new = gates_to_hc(gates1, c1[...])
    h1[...] = h1_new
    c1[...] = c1_new

    # stream h1 for this timestep back out; projection happens later in bulk.
    h1_out_ref[0] = h1_new.astype(h1_out_ref.dtype)


def _lstm_recurrent(gates_x0, whh0, wih1, whh1, b1, hidden_size):
    T, Bp, fourH = gates_x0.shape
    H = hidden_size
    return pl.pallas_call(
        _lstm_recurrent_kernel,
        out_shape=jax.ShapeDtypeStruct((T, Bp, H), jnp.bfloat16),
        grid_spec=pltpu.PrefetchScalarGridSpec(
            num_scalar_prefetch=0,
            grid=(T,),
            in_specs=[
                pl.BlockSpec((1, Bp, fourH), lambda t: (t, 0, 0)),  # streamed
                pl.BlockSpec((H, fourH), lambda t: (0, 0)),         # resident
                pl.BlockSpec((H, fourH), lambda t: (0, 0)),
                pl.BlockSpec((H, fourH), lambda t: (0, 0)),
                pl.BlockSpec((1, fourH), lambda t: (0, 0)),
            ],
            out_specs=pl.BlockSpec((1, Bp, H), lambda t: (t, 0, 0)),
            scratch_shapes=[pltpu.VMEM((Bp, H), jnp.float32)] * 4,
        ),
        compiler_params=pltpu.CompilerParams(
            # time axis is inherently serial (state carried in scratch)
            dimension_semantics=("arbitrary",),
            vmem_limit_bytes=32 * 1024 * 1024,
        ),
    )(gates_x0, whh0, wih1, whh1, b1)


# --------------------------------------------------------------------------- #
# Full forward pass                                                            #
# --------------------------------------------------------------------------- #
@functools.partial(jax.jit, static_argnames=())
def decoder_rnn_forward(features, captions, params):
    """features: [B, 1, E] f32; captions: [B, Tc] int32 -> logits [B, 1+Tc, V]."""
    H = params['whh0'].shape[0]
    V = params['wl'].shape[1]
    E = params['wih0'].shape[0]

    # ---- glue: embedding gather + concat (matches the PyTorch forward) ----
    emb = params['embedding'][captions]                                 # [B, Tc, E]
    x = jnp.concatenate([features.astype(jnp.float32), emb], axis=1)    # [B, T, E]
    B, T, _ = x.shape

    # time-major, batch padded to a multiple of 8 sublanes.
    Bp = _round_up(B, 8)
    x_tm = jnp.transpose(x, (1, 0, 2))                                  # [T, B, E]
    x_tm = jnp.pad(x_tm, ((0, 0), (0, Bp - B), (0, 0)))

    # bf16 matmul operands (MXU), f32 accumulation / elementwise gate math.
    wih0 = params['wih0'].astype(jnp.bfloat16)
    whh0 = params['whh0'].astype(jnp.bfloat16)
    wih1 = params['wih1'].astype(jnp.bfloat16)
    whh1 = params['whh1'].astype(jnp.bfloat16)
    wl = params['wl'].astype(jnp.bfloat16)

    # (1) hoisted layer-0 input->hidden pre-activations: one big tiled matmul.
    gx0 = pallas_matmul_bias(
        x_tm.reshape(T * Bp, E).astype(jnp.bfloat16), wih0, params['b0'],
        out_dtype=jnp.float32).reshape(T, Bp, 4 * H)

    # (2) serial recurrence over T; only h @ W_hh (+ layer-1 cell) per step.
    # TODO(synk): for large B on v7x, add a leading size-2 'parallel' grid axis to
    # split the batch across the two TensorCores.
    h1_seq = _lstm_recurrent(gx0, whh0, wih1, whh1, params['b1'], H)    # [T, Bp, H]

    # (3) output projection as one big tiled matmul over T*Bp rows, tiled over V.
    logits = pallas_matmul_bias(
        h1_seq.reshape(T * Bp, H), wl, params['bl'],
        out_dtype=jnp.float32).reshape(T, Bp, V)

    # un-pad batch and return batch-first [B, T, V].
    return jnp.transpose(logits[:, :B, :], (1, 0, 2))


def init_params(key, embed_size, hidden_size, vocab_size):
    """Synthetic params matching nn.Embedding / nn.LSTM(2 layers) / nn.Linear.

    LSTM weights are stored pre-transposed (W^T, i.e. [in, 4H]); the two LSTM
    biases (b_ih + b_hh) are folded into one [1, 4H] bias per layer.
    """
    ks = jax.random.split(key, 11)
    bound = 1.0 / jnp.sqrt(jnp.float32(hidden_size))

    def unif(k, shape):
        return jax.random.uniform(k, shape, jnp.float32, -bound, bound)

    return {
        'embedding': jax.random.normal(ks[0], (vocab_size, embed_size), jnp.float32),
        # layer 0: input size = embed_size
        'wih0': unif(ks[1], (embed_size, 4 * hidden_size)),
        'whh0': unif(ks[2], (hidden_size, 4 * hidden_size)),
        'b0':   unif(ks[3], (1, 4 * hidden_size)) + unif(ks[4], (1, 4 * hidden_size)),
        # layer 1: input size = hidden_size
        'wih1': unif(ks[5], (hidden_size, 4 * hidden_size)),
        'whh1': unif(ks[6], (hidden_size, 4 * hidden_size)),
        'b1':   unif(ks[7], (1, 4 * hidden_size)) + unif(ks[8], (1, 4 * hidden_size)),
        # linear: hidden_size -> vocab_size (stored as W^T)
        'wl':   unif(ks[9], (hidden_size, vocab_size)),
        'bl':   unif(ks[10], (1, vocab_size)),
    }


if __name__ == "__main__":
    # Small, lane-friendly shapes consistent with the module's forward():
    #   features [B, 1, E], captions [B, Tc] -> output [B, 1+Tc, V]
    B, Tc, E, H, V = 2, 8, 128, 128, 256

    key = jax.random.PRNGKey(0)
    k_params, k_feat, k_cap = jax.random.split(key, 3)

    params = init_params(k_params, embed_size=E, hidden_size=H, vocab_size=V)
    features = jax.random.normal(k_feat, (B, 1, E), jnp.float32)
    captions = jax.random.randint(k_cap, (B, Tc), 0, V, dtype=jnp.int32)

    logits = decoder_rnn_forward(features, captions, params)
    logits = jax.block_until_ready(logits)

    assert logits.shape == (B, 1 + Tc, V), logits.shape
    assert logits.dtype == jnp.float32
    assert bool(jnp.all(jnp.isfinite(logits)))

    print("KERNEL_OK")
</pallas_src>

<mosaic_0001>
module attributes {stable_mosaic.version = 11 : i64} {
  func.func @_matmul_bias_kernel(%arg0: i32, %arg1: i32, %arg2: i32, %arg3: memref<72x128xbf16, #tpu.memory_space<vmem>>, %arg4: memref<128x256xbf16, #tpu.memory_space<vmem>>, %arg5: memref<1x256xf32, #tpu.memory_space<vmem>>, %arg6: memref<72x256xf32, #tpu.memory_space<vmem>>, %arg7: memref<72x256xf32, #tpu.memory_space<vmem>>) attributes {dimension_semantics = [#tpu.dimension_semantics<parallel>, #tpu.dimension_semantics<parallel>, #tpu.dimension_semantics<arbitrary>], iteration_bounds = array<i64: 1, 2, 1>, scalar_prefetch = 0 : i64, scratch_operands = 1 : i64, tpu.core_type = #tpu.core_type<tc>, window_params = [{transform_indices = @transform_0, window_bounds = array<i64: 72, 128>}, {transform_indices = @transform_1, window_bounds = array<i64: 128, 256>}, {transform_indices = @transform_2, window_bounds = array<i64: 1, 256>}, {transform_indices = @transform_3, window_bounds = array<i64: 72, 256>}]} {
    %c0_i32 = arith.constant 0 : i32
    %0 = arith.cmpi eq, %arg2, %c0_i32 : i32
    %1 = arith.extui %0 : i1 to i32
    %c0_i32_0 = arith.constant 0 : i32
    %2 = arith.cmpi ne, %1, %c0_i32_0 : i32
    scf.if %2 {
      %cst_10 = arith.constant 0.000000e+00 : f32
      %12 = vector.broadcast %cst_10 : f32 to vector<72x256xf32>
      %c0_11 = arith.constant 0 : index
      %c0_12 = arith.constant 0 : index
      %13 = vector.load %arg7[%c0_11, %c0_12] : memref<72x256xf32, #tpu.memory_space<vmem>>, vector<72x256xf32>
      tpu.vector_store %arg7[%c0_11, %c0_12], %12 {strides = array<i32>} : memref<72x256xf32, #tpu.memory_space<vmem>>, vector<72x256xf32>,
    } else {
    }
    %c0 = arith.constant 0 : index
    %c0_1 = arith.constant 0 : index
    %3 = vector.load %arg7[%c0, %c0_1] : memref<72x256xf32, #tpu.memory_space<vmem>>, vector<72x256xf32>
    %c0_2 = arith.constant 0 : index
    %c0_3 = arith.constant 0 : index
    %4 = vector.load %arg3[%c0_2, %c0_3] : memref<72x128xbf16, #tpu.memory_space<vmem>>, vector<72x128xbf16>
    %c0_4 = arith.constant 0 : index
    %c0_5 = arith.constant 0 : index
    %5 = vector.load %arg4[%c0_4, %c0_5] : memref<128x256xbf16, #tpu.memory_space<vmem>>, vector<128x256xbf16>
    %cst = arith.constant dense<0.000000e+00> : vector<72x256xf32>
    %6 = tpu.matmul %4, %5, %cst {dimension_numbers = #tpu.dot_dimension_numbers<[1], [0], [0], [1], [0, 0, 1, 1], [], []>} : vector<72x128xbf16>, vector<128x256xbf16>, vector<72x256xf32> -> vector<72x256xf32>
    %7 = arith.addf %3, %6 : vector<72x256xf32>
    %c0_6 = arith.constant 0 : index
    %c0_7 = arith.constant 0 : index
    %8 = vector.load %arg7[%c0_6, %c0_7] : memref<72x256xf32, #tpu.memory_space<vmem>>, vector<72x256xf32>
    tpu.vector_store %arg7[%c0_6, %c0_7], %7 {strides = array<i32>} : memref<72x256xf32, #tpu.memory_space<vmem>>, vector<72x256xf32>,
    %c0_i32_8 = arith.constant 0 : i32
    %9 = arith.cmpi eq, %arg2, %c0_i32_8 : i32
    %10 = arith.extui %9 : i1 to i32
    %c0_i32_9 = arith.constant 0 : i32
    %11 = arith.cmpi ne, %10, %c0_i32_9 : i32
    scf.if %11 {
      %c0_10 = arith.constant 0 : index
      %c0_11 = arith.constant 0 : index
      %12 = vector.load %arg7[%c0_10, %c0_11] : memref<72x256xf32, #tpu.memory_space<vmem>>, vector<72x256xf32>
      %c0_12 = arith.constant 0 : index
      %c0_13 = arith.constant 0 : index
      %13 = vector.load %arg5[%c0_12, %c0_13] : memref<1x256xf32, #tpu.memory_space<vmem>>, vector<1x256xf32>
      %14 = vector.broadcast %13 : vector<1x256xf32> to vector<72x256xf32>
      %15 = arith.addf %12, %14 : vector<72x256xf32>
      %c0_14 = arith.constant 0 : index
      %c0_15 = arith.constant 0 : index
      %16 = vector.load %arg6[%c0_14, %c0_15] : memref<72x256xf32, #tpu.memory_space<vmem>>, vector<72x256xf32>
      tpu.vector_store %arg6[%c0_14, %c0_15], %15 {strides = array<i32>} : memref<72x256xf32, #tpu.memory_space<vmem>>, vector<72x256xf32>,
    } else {
    }
    return
  }
  func.func @transform_0(%arg0: i32, %arg1: i32, %arg2: i32) -> (i32, i32) {
    %c0_i32 = arith.constant 0 : i32
    return %arg0, %arg2 : i32, i32
  }
  func.func @transform_1(%arg0: i32, %arg1: i32, %arg2: i32) -> (i32, i32) {
    %c0_i32 = arith.constant 0 : i32
    return %arg2, %arg1 : i32, i32
  }
  func.func @transform_2(%arg0: i32, %arg1: i32, %arg2: i32) -> (i32, i32) {
    %c0_i32 = arith.constant 0 : i32
    %c0_i32_0 = arith.constant 0 : i32
    return %c0_i32, %arg1 : i32, i32
  }
  func.func @transform_3(%arg0: i32, %arg1: i32, %arg2: i32) -> (i32, i32) {
    %c0_i32 = arith.constant 0 : i32
    return %arg0, %arg1 : i32, i32
  }
}

module attributes {stable_mosaic.version = 11 : i64} {
  func.func @_matmul_bias_kernel(%arg0: i32, %arg1: i32, %arg2: i32, %arg3: memref<72x128xbf16, #tpu.memory_space<vmem>>, %arg4: memref<128x256xbf16, #tpu.memory_space<vmem>>, %arg5: memref<1x256xf32, #tpu.memory_space<vmem>>, %arg6: memref<72x256xf32, #tpu.memory_space<vmem>>, %arg7: memref<72x256xf32, #tpu.memory_space<vmem>>) attributes {dimension_semantics = [#tpu.dimension_semantics<parallel>, #tpu.dimension_semantics<parallel>, #tpu.dimension_semantics<arbitrary>], iteration_bounds = array<i64: 1, 1, 1>, scalar_prefetch = 0 : i64, scratch_operands = 1 : i64, tpu.core_type = #tpu.core_type<tc>, window_params = [{transform_indices = @transform_0, window_bounds = array<i64: 72, 128>}, {transform_indices = @transform_1, window_bounds = array<i64: 128, 256>}, {transform_indices = @transform_2, window_bounds = array<i64: 1, 256>}, {transform_indices = @transform_3, window_bounds = array<i64: 72, 256>}]} {
    %c0_i32 = arith.constant 0 : i32
    %0 = arith.cmpi eq, %arg2, %c0_i32 : i32
    %1 = arith.extui %0 : i1 to i32
    %c0_i32_0 = arith.constant 0 : i32
    %2 = arith.cmpi ne, %1, %c0_i32_0 : i32
    scf.if %2 {
      %cst_10 = arith.constant 0.000000e+00 : f32
      %12 = vector.broadcast %cst_10 : f32 to vector<72x256xf32>
      %c0_11 = arith.constant 0 : index
      %c0_12 = arith.constant 0 : index
      %13 = vector.load %arg7[%c0_11, %c0_12] : memref<72x256xf32, #tpu.memory_space<vmem>>, vector<72x256xf32>
      tpu.vector_store %arg7[%c0_11, %c0_12], %12 {strides = array<i32>} : memref<72x256xf32, #tpu.memory_space<vmem>>, vector<72x256xf32>,
    } else {
    }
    %c0 = arith.constant 0 : index
    %c0_1 = arith.constant 0 : index
    %3 = vector.load %arg7[%c0, %c0_1] : memref<72x256xf32, #tpu.memory_space<vmem>>, vector<72x256xf32>
    %c0_2 = arith.constant 0 : index
    %c0_3 = arith.constant 0 : index
    %4 = vector.load %arg3[%c0_2, %c0_3] : memref<72x128xbf16, #tpu.memory_space<vmem>>, vector<72x128xbf16>
    %c0_4 = arith.constant 0 : index
    %c0_5 = arith.constant 0 : index
    %5 = vector.load %arg4[%c0_4, %c0_5] : memref<128x256xbf16, #tpu.memory_space<vmem>>, vector<128x256xbf16>
    %cst = arith.constant dense<0.000000e+00> : vector<72x256xf32>
    %6 = tpu.matmul %4, %5, %cst {dimension_numbers = #tpu.dot_dimension_numbers<[1], [0], [0], [1], [0, 0, 1, 1], [], []>} : vector<72x128xbf16>, vector<128x256xbf16>, vector<72x256xf32> -> vector<72x256xf32>
    %7 = arith.addf %3, %6 : vector<72x256xf32>
    %c0_6 = arith.constant 0 : index
    %c0_7 = arith.constant 0 : index
    %8 = vector.load %arg7[%c0_6, %c0_7] : memref<72x256xf32, #tpu.memory_space<vmem>>, vector<72x256xf32>
    tpu.vector_store %arg7[%c0_6, %c0_7], %7 {strides = array<i32>} : memref<72x256xf32, #tpu.memory_space<vmem>>, vector<72x256xf32>,
    %c0_i32_8 = arith.constant 0 : i32
    %9 = arith.cmpi eq, %arg2, %c0_i32_8 : i32
    %10 = arith.extui %9 : i1 to i32
    %c0_i32_9 = arith.constant 0 : i32
    %11 = arith.cmpi ne, %10, %c0_i32_9 : i32
    scf.if %11 {
      %c0_10 = arith.constant 0 : index
      %c0_11 = arith.constant 0 : index
      %12 = vector.load %arg7[%c0_10, %c0_11] : memref<72x256xf32, #tpu.memory_space<vmem>>, vector<72x256xf32>
      %c0_12 = arith.constant 0 : index
      %c0_13 = arith.constant 0 : index
      %13 = vector.load %arg5[%c0_12, %c0_13] : memref<1x256xf32, #tpu.memory_space<vmem>>, vector<1x256xf32>
      %14 = vector.broadcast %13 : vector<1x256xf32> to vector<72x256xf32>
      %15 = arith.addf %12, %14 : vector<72x256xf32>
      %c0_14 = arith.constant 0 : index
      %c0_15 = arith.constant 0 : index
      %16 = vector.load %arg6[%c0_14, %c0_15] : memref<72x256xf32, #tpu.memory_space<vmem>>, vector<72x256xf32>
      tpu.vector_store %arg6[%c0_14, %c0_15], %15 {strides = array<i32>} : memref<72x256xf32, #tpu.memory_space<vmem>>, vector<72x256xf32>,
    } else {
    }
    return
  }
  func.func @transform_0(%arg0: i32, %arg1: i32, %arg2: i32) -> (i32, i32) {
    %c0_i32 = arith.constant 0 : i32
    return %arg0, %arg2 : i32, i32
  }
  func.func @transform_1(%arg0: i32, %arg1: i32, %arg2: i32) -> (i32, i32) {
    %c0_i32 = arith.constant 0 : i32
    return %arg2, %arg1 : i32, i32
  }
  func.func @transform_2(%arg0: i32, %arg1: i32, %arg2: i32) -> (i32, i32) {
    %c0_i32 = arith.constant 0 : i32
    %c0_i32_0 = arith.constant 0 : i32
    return %c0_i32, %arg1 : i32, i32
  }
  func.func @transform_3(%arg0: i32, %arg1: i32, %arg2: i32) -> (i32, i32) {
    %c0_i32 = arith.constant 0 : i32
    return %arg0, %arg1 : i32, i32
  }
}

module attributes {stable_mosaic.version = 11 : i64} {
  func.func @_lstm_recurrent_kernel(%arg0: i32, %arg1: memref<1x8x512xf32, #tpu.memory_space<vmem>>, %arg2: memref<128x512xbf16, #tpu.memory_space<vmem>>, %arg3: memref<128x512xbf16, #tpu.memory_space<vmem>>, %arg4: memref<128x512xbf16, #tpu.memory_space<vmem>>, %arg5: memref<1x512xf32, #tpu.memory_space<vmem>>, %arg6: memref<1x8x128xbf16, #tpu.memory_space<vmem>>, %arg7: memref<8x128xf32, #tpu.memory_space<vmem>>, %arg8: memref<8x128xf32, #tpu.memory_space<vmem>>, %arg9: memref<8x128xf32, #tpu.memory_space<vmem>>, %arg10: memref<8x128xf32, #tpu.memory_space<vmem>>) attributes {dimension_semantics = [#tpu.dimension_semantics<arbitrary>], iteration_bounds = array<i64: 9>, scalar_prefetch = 0 : i64, scratch_operands = 4 : i64, tpu.core_type = #tpu.core_type<tc>, window_params = [{transform_indices = @transform_0, window_bounds = array<i64: 1, 8, 512>}, {pipeline_mode = #tpu.pipeline_mode<synchronous>, transform_indices = @transform_1, window_bounds = array<i64: 128, 512>}, {pipeline_mode = #tpu.pipeline_mode<synchronous>, transform_indices = @transform_2, window_bounds = array<i64: 128, 512>}, {pipeline_mode = #tpu.pipeline_mode<synchronous>, transform_indices = @transform_3, window_bounds = array<i64: 128, 512>}, {pipeline_mode = #tpu.pipeline_mode<synchronous>, transform_indices = @transform_4, window_bounds = array<i64: 1, 512>}, {transform_indices = @transform_5, window_bounds = array<i64: 1, 8, 128>}]} {
    %c0_i32 = arith.constant 0 : i32
    %0 = arith.cmpi eq, %arg0, %c0_i32 : i32
    %1 = arith.extui %0 : i1 to i32
    %c0_i32_0 = arith.constant 0 : i32
    %2 = arith.cmpi ne, %1, %c0_i32_0 : i32
    scf.if %2 {
      %cst_38 = arith.constant 0.000000e+00 : f32
      %81 = vector.broadcast %cst_38 : f32 to vector<8x128xf32>
      %c0_39 = arith.constant 0 : index
      %c0_40 = arith.constant 0 : index
      %82 = vector.load %arg7[%c0_39, %c0_40] : memref<8x128xf32, #tpu.memory_space<vmem>>, vector<8x128xf32>
      tpu.vector_store %arg7[%c0_39, %c0_40], %81 {strides = array<i32>} : memref<8x128xf32, #tpu.memory_space<vmem>>, vector<8x128xf32>,
      %cst_41 = arith.constant 0.000000e+00 : f32
      %83 = vector.broadcast %cst_41 : f32 to vector<8x128xf32>
      %c0_42 = arith.constant 0 : index
      %c0_43 = arith.constant 0 : index
      %84 = vector.load %arg8[%c0_42, %c0_43] : memref<8x128xf32, #tpu.memory_space<vmem>>, vector<8x128xf32>
      tpu.vector_store %arg8[%c0_42, %c0_43], %83 {strides = array<i32>} : memref<8x128xf32, #tpu.memory_space<vmem>>, vector<8x128xf32>,
      %cst_44 = arith.constant 0.000000e+00 : f32
      %85 = vector.broadcast %cst_44 : f32 to vector<8x128xf32>
      %c0_45 = arith.constant 0 : index
      %c0_46 = arith.constant 0 : index
      %86 = vector.load %arg9[%c0_45, %c0_46] : memref<8x128xf32, #tpu.memory_space<vmem>>, vector<8x128xf32>
      tpu.vector_store %arg9[%c0_45, %c0_46], %85 {strides = array<i32>} : memref<8x128xf32, #tpu.memory_space<vmem>>, vector<8x128xf32>,
      %cst_47 = arith.constant 0.000000e+00 : f32
      %87 = vector.broadcast %cst_47 : f32 to vector<8x128xf32>
      %c0_48 = arith.constant 0 : index
      %c0_49 = arith.constant 0 : index
      %88 = vector.load %arg10[%c0_48, %c0_49] : memref<8x128xf32, #tpu.memory_space<vmem>>, vector<8x128xf32>
      tpu.vector_store %arg10[%c0_48, %c0_49], %87 {strides = array<i32>} : memref<8x128xf32, #tpu.memory_space<vmem>>, vector<8x128xf32>,
    } else {
    }
    %c0 = arith.constant 0 : index
    %c0_1 = arith.constant 0 : index
    %c0_2 = arith.constant 0 : index
    %3 = vector.load %arg1[%c0, %c0_1, %c0_2] : memref<1x8x512xf32, #tpu.memory_space<vmem>>, vector<1x8x512xf32>
    %4 = vector.shape_cast %3 : vector<1x8x512xf32> to vector<8x512xf32>
    %c0_3 = arith.constant 0 : index
    %c0_4 = arith.constant 0 : index
    %5 = vector.load %arg7[%c0_3, %c0_4] : memref<8x128xf32, #tpu.memory_space<vmem>>, vector<8x128xf32>
    %6 = arith.truncf %5 : vector<8x128xf32> to vector<8x128xbf16>
    %c0_5 = arith.constant 0 : index
    %c0_6 = arith.constant 0 : index
    %7 = vector.load %arg2[%c0_5, %c0_6] : memref<128x512xbf16, #tpu.memory_space<vmem>>, vector<128x512xbf16>
    %cst = arith.constant dense<0.000000e+00> : vector<8x512xf32>
    %8 = tpu.matmul %6, %7, %cst {dimension_numbers = #tpu.dot_dimension_numbers<[1], [0], [0], [1], [0, 0, 1, 1], [], []>} : vector<8x128xbf16>, vector<128x512xbf16>, vector<8x512xf32> -> vector<8x512xf32>
    %9 = arith.addf %4, %8 : vector<8x512xf32>
    %c0_7 = arith.constant 0 : index
    %c0_8 = arith.constant 0 : index
    %10 = vector.load %arg8[%c0_7, %c0_8] : memref<8x128xf32, #tpu.memory_space<vmem>>, vector<8x128xf32>
    %11 = vector.extract_strided_slice %9 {offsets = [0, 0], sizes = [8, 128], strides = [1, 1]} : vector<8x512xf32> to vector<8x128xf32>
    %12 = arith.negf %11 : vector<8x128xf32>
    %13 = math.exp %12 : vector<8x128xf32>
    %cst_9 = arith.constant 1.000000e+00 : f32
    %14 = vector.broadcast %cst_9 : f32 to vector<8x128xf32>
    %15 = arith.addf %14, %13 : vector<8x128xf32>
    %16 = arith.divf %14, %15 : vector<8x128xf32>
    %17 = vector.extract_strided_slice %9 {offsets = [0, 128], sizes = [8, 128], strides = [1, 1]} : vector<8x512xf32> to vector<8x128xf32>
    %18 = arith.negf %17 : vector<8x128xf32>
    %19 = math.exp %18 : vector<8x128xf32>
    %cst_10 = arith.constant 1.000000e+00 : f32
    %20 = vector.broadcast %cst_10 : f32 to vector<8x128xf32>
    %21 = arith.addf %20, %19 : vector<8x128xf32>
    %22 = arith.divf %20, %21 : vector<8x128xf32>
    %23 = vector.extract_strided_slice %9 {offsets = [0, 256], sizes = [8, 128], strides = [1, 1]} : vector<8x512xf32> to vector<8x128xf32>
    %24 = math.tanh %23 : vector<8x128xf32>
    %25 = vector.extract_strided_slice %9 {offsets = [0, 384], sizes = [8, 128], strides = [1, 1]} : vector<8x512xf32> to vector<8x128xf32>
    %26 = arith.negf %25 : vector<8x128xf32>
    %27 = math.exp %26 : vector<8x128xf32>
    %cst_11 = arith.constant 1.000000e+00 : f32
    %28 = vector.broadcast %cst_11 : f32 to vector<8x128xf32>
    %29 = arith.addf %28, %27 : vector<8x128xf32>
    %30 = arith.divf %28, %29 : vector<8x128xf32>
    %31 = arith.mulf %22, %10 : vector<8x128xf32>
    %32 = arith.mulf %16, %24 : vector<8x128xf32>
    %33 = arith.addf %31, %32 : vector<8x128xf32>
    %34 = math.tanh %33 : vector<8x128xf32>
    %35 = arith.mulf %30, %34 : vector<8x128xf32>
    %c0_12 = arith.constant 0 : index
    %c0_13 = arith.constant 0 : index
    %36 = vector.load %arg7[%c0_12, %c0_13] : memref<8x128xf32, #tpu.memory_space<vmem>>, vector<8x128xf32>
    tpu.vector_store %arg7[%c0_12, %c0_13], %35 {strides = array<i32>} : memref<8x128xf32, #tpu.memory_space<vmem>>, vector<8x128xf32>,
    %c0_14 = arith.constant 0 : index
    %c0_15 = arith.constant 0 : index
    %37 = vector.load %arg8[%c0_14, %c0_15] : memref<8x128xf32, #tpu.memory_space<vmem>>, vector<8x128xf32>
    tpu.vector_store %arg8[%c0_14, %c0_15], %33 {strides = array<i32>} : memref<8x128xf32, #tpu.memory_space<vmem>>, vector<8x128xf32>,
    %38 = arith.truncf %35 : vector<8x128xf32> to vector<8x128xbf16>
    %c0_16 = arith.constant 0 : index
    %c0_17 = arith.constant 0 : index
    %39 = vector.load %arg3[%c0_16, %c0_17] : memref<128x512xbf16, #tpu.memory_space<vmem>>, vector<128x512xbf16>
    %cst_18 = arith.constant dense<0.000000e+00> : vector<8x512xf32>
    %40 = tpu.matmul %38, %39, %cst_18 {dimension_numbers = #tpu.dot_dimension_numbers<[1], [0], [0], [1], [0, 0, 1, 1], [], []>} : vector<8x128xbf16>, vector<128x512xbf16>, vector<8x512xf32> -> vector<8x512xf32>
    %c0_19 = arith.constant 0 : index
    %c0_20 = arith.constant 0 : index
    %41 = vector.load %arg9[%c0_19, %c0_20] : memref<8x128xf32, #tpu.memory_space<vmem>>, vector<8x128xf32>
    %42 = arith.truncf %41 : vector<8x128xf32> to vector<8x128xbf16>
    %c0_21 = arith.constant 0 : index
    %c0_22 = arith.constant 0 : index
    %43 = vector.load %arg4[%c0_21, %c0_22] : memref<128x512xbf16, #tpu.memory_space<vmem>>, vector<128x512xbf16>
    %cst_23 = arith.constant dense<0.000000e+00> : vector<8x512xf32>
    %44 = tpu.matmul %42, %43, %cst_23 {dimension_numbers = #tpu.dot_dimension_numbers<[1], [0], [0], [1], [0, 0, 1, 1], [], []>} : vector<8x128xbf16>, vector<128x512xbf16>, vector<8x512xf32> -> vector<8x512xf32>
    %45 = arith.addf %40, %44 : vector<8x512xf32>
    %c0_24 = arith.constant 0 : index
    %c0_25 = arith.constant 0 : index
    %46 = vector.load %arg5[%c0_24, %c0_25] : memref<1x512xf32, #tpu.memory_space<vmem>>, vector<1x512xf32>
    %47 = vector.broadcast %46 : vector<1x512xf32> to vector<8x512xf32>
    %48 = arith.addf %45, %47 : vector<8x512xf32>
    %c0_26 = arith.constant 0 : index
    %c0_27 = arith.constant 0 : index
    %49 = vector.load %arg10[%c0_26, %c0_27] : memref<8x128xf32, #tpu.memory_space<vmem>>, vector<8x128xf32>
    %50 = vector.extract_strided_slice %48 {offsets = [0, 0], sizes = [8, 128], strides = [1, 1]} : vector<8x512xf32> to vector<8x128xf32>
    %51 = arith.negf %50 : vector<8x128xf32>
    %52 = math.exp %51 : vector<8x128xf32>
    %cst_28 = arith.constant 1.000000e+00 : f32
    %53 = vector.broadcast %cst_28 : f32 to vector<8x128xf32>
    %54 = arith.addf %53, %52 : vector<8x128xf32>
    %55 = arith.divf %53, %54 : vector<8x128xf32>
    %56 = vector.extract_strided_slice %48 {offsets = [0, 128], sizes = [8, 128], strides = [1, 1]} : vector<8x512xf32> to vector<8x128xf32>
    %57 = arith.negf %56 : vector<8x128xf32>
    %58 = math.exp %57 : vector<8x128xf32>
    %cst_29 = arith.constant 1.000000e+00 : f32
    %59 = vector.broadcast %cst_29 : f32 to vector<8x128xf32>
    %60 = arith.addf %59, %58 : vector<8x128xf32>
    %61 = arith.divf %59, %60 : vector<8x128xf32>
    %62 = vector.extract_strided_slice %48 {offsets = [0, 256], sizes = [8, 128], strides = [1, 1]} : vector<8x512xf32> to vector<8x128xf32>
    %63 = math.tanh %62 : vector<8x128xf32>
    %64 = vector.extract_strided_slice %48 {offsets = [0, 384], sizes = [8, 128], strides = [1, 1]} : vector<8x512xf32> to vector<8x128xf32>
    %65 = arith.negf %64 : vector<8x128xf32>
    %66 = math.exp %65 : vector<8x128xf32>
    %cst_30 = arith.constant 1.000000e+00 : f32
    %67 = vector.broadcast %cst_30 : f32 to vector<8x128xf32>
    %68 = arith.addf %67, %66 : vector<8x128xf32>
    %69 = arith.divf %67, %68 : vector<8x128xf32>
    %70 = arith.mulf %61, %49 : vector<8x128xf32>
    %71 = arith.mulf %55, %63 : vector<8x128xf32>
    %72 = arith.addf %70, %71 : vector<8x128xf32>
    %73 = math.tanh %72 : vector<8x128xf32>
    %74 = arith.mulf %69, %73 : vector<8x128xf32>
    %c0_31 = arith.constant 0 : index
    %c0_32 = arith.constant 0 : index
    %75 = vector.load %arg9[%c0_31, %c0_32] : memref<8x128xf32, #tpu.memory_space<vmem>>, vector<8x128xf32>
    tpu.vector_store %arg9[%c0_31, %c0_32], %74 {strides = array<i32>} : memref<8x128xf32, #tpu.memory_space<vmem>>, vector<8x128xf32>,
    %c0_33 = arith.constant 0 : index
    %c0_34 = arith.constant 0 : index
    %76 = vector.load %arg10[%c0_33, %c0_34] : memref<8x128xf32, #tpu.memory_space<vmem>>, vector<8x128xf32>
    tpu.vector_store %arg10[%c0_33, %c0_34], %72 {strides = array<i32>} : memref<8x128xf32, #tpu.memory_space<vmem>>, vector<8x128xf32>,
    %77 = arith.truncf %74 : vector<8x128xf32> to vector<8x128xbf16>
    %c0_35 = arith.constant 0 : index
    %c0_36 = arith.constant 0 : index
    %c0_37 = arith.constant 0 : index
    %78 = vector.load %arg6[%c0_35, %c0_36, %c0_37] : memref<1x8x128xbf16, #tpu.memory_space<vmem>>, vector<1x8x128xbf16>
    %79 = vector.shape_cast %78 : vector<1x8x128xbf16> to vector<8x128xbf16>
    %80 = vector.shape_cast %77 : vector<8x128xbf16> to vector<1x8x128xbf16>
    tpu.vector_store %arg6[%c0_35, %c0_36, %c0_37], %80 {strides = array<i32>} : memref<1x8x128xbf16, #tpu.memory_space<vmem>>, vector<1x8x128xbf16>,
    return
  }
  func.func @transform_0(%arg0: i32) -> (i32, i32, i32) {
    %c0_i32 = arith.constant 0 : i32
    %c0_i32_0 = arith.constant 0 : i32
    %c0_i32_1 = arith.constant 0 : i32
    return %arg0, %c0_i32, %c0_i32_0 : i32, i32, i32
  }
  func.func @transform_1(%arg0: i32) -> (i32, i32) {
    %c0_i32 = arith.constant 0 : i32
    %c0_i32_0 = arith.constant 0 : i32
    %c0_i32_1 = arith.constant 0 : i32
    return %c0_i32, %c0_i32_0 : i32, i32
  }
  func.func @transform_2(%arg0: i32) -> (i32, i32) {
    %c0_i32 = arith.constant 0 : i32
    %c0_i32_0 = arith.constant 0 : i32
    %c0_i32_1 = arith.constant 0 : i32
    return %c0_i32, %c0_i32_0 : i32, i32
  }
  func.func @transform_3(%arg0: i32) -> (i32, i32) {
    %c0_i32 = arith.constant 0 : i32
    %c0_i32_0 = arith.constant 0 : i32
    %c0_i32_1 = arith.constant 0 : i32
    return %c0_i32, %c0_i32_0 : i32, i32
  }
  func.func @transform_4(%arg0: i32) -> (i32, i32) {
    %c0_i32 = arith.constant 0 : i32
    %c0_i32_0 = arith.constant 0 : i32
    %c0_i32_1 = arith.constant 0 : i32
    return %c0_i32, %c0_i32_0 : i32, i32
  }
  func.func @transform_5(%arg0: i32) -> (i32, i32, i32) {
    %c0_i32 = arith.constant 0 : i32
    %c0_i32_0 = arith.constant 0 : i32
    %c0_i32_1 = arith.constant 0 : i32
    return %arg0, %c0_i32, %c0_i32_0 : i32, i32, i32
  }
}

</mosaic_0001>

<bundles_post_ra>
// kernel: decoder_rnn_forward.3
= control target key start
LH: loop header
LB: loop body
LE: loop exit
PB: predicated region body
PF: predicated region fallthrough
CT: control target
= control target key end

     0   :  { %s1054_s12 = smov 0   ;;  %s1056_s13 = smov 0   ;;  %s1243_s0 = inlined_call_operand.vmem [shape: bf16[72,128], index: 0, kind: input, shape index: {}]   ;;  %s1244_s1 = inlined_call_operand.vmem [shape: bf16[128,512], index: 1, kind: input, shape index: {}]   ;;  %s1245_s2 = inlined_call_operand.vmem [shape: f32[1,512], index: 2, kind: input, shape index: {}]   ;;  %s1246_s3 = inlined_call_operand.vmem [shape: f32[72,512], index: 3, kind: output, shape index: {}]  }
   0x1   :  { %s1058_s14 = smov 0   ;;  %s1060_s15 = smov 0  }
   0x2   :  { %s1062_s16 = smov 0  }
   0x3 LB: > { %s28_s17 = sadd.s32 1, %s1027_s15  ;;  %s868_s18 = sadd.s32 4294967295, %s1031_s16   ;;  %s1031_s16 = sphi %s1062_s16, %s13_s16   ;;  %s1027_s15 = sphi %s1060_s15, %s1251_s15   ;;  %s1023_s14 = sphi %s1058_s14, %s1250_s14   ;;  %s1019_s13 = sphi %s1056_s13, %s1249_s13   ;;  %s1015_s12 = sphi %s1054_s12, %s1248_s12  }
   0x4   : > { %p30_p0 = scmp.ge.s32.totalorder %s28_s17, 2  ;;  %p76_p1 = scmp.ne.s32.totalorder %s1019_s13, %s1015_s12 }
   0x5   : > { %p77_p2 = scmp.eq.s32.totalorder %s1031_s16, 0  ;;  %p134_p4 = scmp.eq.s32.totalorder %s868_s18, 1 }
   0x6   : > { %s1253_s17 = smov (%p30_p0, %s28_s17), 0  ;;  %s69_s20 = sadd.s32 1, %s1019_s13 }
   0x7   : > { %p78_p3 = por %p77_p2, %p76_p1  ;;  %s65_s19 = ssub.s32 %s1027_s15, %s1253_s17 }
   0x8   : > { %p67_p5 = scmp.eq.s32.totalorder %s65_s19, 0  ;;  %p1089_p6 = por %p134_p4, %p76_p1 }
   0x9   : > { %p872_p7 = scmp.ge.s32.totalorder %s1031_s16, 2 }
   0xa   : > { %s1094_s22 = scalar_select %p67_p5, %s1019_s13, %s69_s20  }
   0xb   : > { %168 = sbr.rel (%p872_p7) target bundleno = 28 (0x1c), region = 20 }
  0x10   : > { %171 = sbr.rel (!%p78_p3) target bundleno = 28 (0x1c), region = 24  ;;  %s173_s23 = sand.u32 (%p78_p3), 1, %s1019_s13  }
  0x11   : > { %s904_s24 = sshll.u32 (%p78_p3), %s1027_s15, 3  ;;  %s873_s25 = sshll.u32 (%p78_p3), %s173_s23, 7 }
  0x12   : > { %s1102_s28 = scalar_lea.vmem (%p78_p3), %s1244_s1, %s904_s24  ;;  %s175_s29 = scalar_lea.vmem (%p78_p3), [#allocation3], %s873_s25 }
  0x13   : > { %v240_v0 = vld [vmem:[%s1102_s28] sm:$0xff] (%p78_p3)  ;;  %v242_v1 = vld [vmem:[%s1102_s28 + $0x10] sm:$0xff] (%p78_p3) }
  0x14   : > { %v244_v2 = vld [vmem:[%s1102_s28 + $0x20] sm:$0xff] (%p78_p3)  ;;  %241 = vst [vmem:[%s175_s29] sm:$0xff] (%p78_p3), %v240_v0  ;;  %243 = vst [vmem:[%s175_s29 + $0x8] sm:$0xff] (%p78_p3), %v242_v1  ;;  %v246_v3 = vld [vmem:[%s1102_s28 + $0x30] sm:$0xff] (%p78_p3) }
  0x15   : > { %245 = vst [vmem:[%s175_s29 + $0x10] sm:$0xff] %v244_v2  ;;  %v248_v4 = vld [vmem:[%s1102_s28 + $0x40] sm:$0xff]  ;;  %v250_v5 = vld [vmem:[%s1102_s28 + $0x50] sm:$0xff]  ;;  %247 = vst [vmem:[%s175_s29 + $0x18] sm:$0xff] %v246_v3 }
  0x16   : > { %249 = vst [vmem:[%s175_s29 + $0x20] sm:$0xff] %v248_v4  ;;  %251 = vst [vmem:[%s175_s29 + $0x28] sm:$0xff] %v250_v5  ;;  %v252_v6 = vld [vmem:[%s1102_s28 + $0x60] sm:$0xff]  ;;  %v254_v7 = vld [vmem:[%s1102_s28 + $0x70] sm:$0xff] }
  0x17   : > { %v256_v8 = vld [vmem:[%s1102_s28 + $0x80] sm:$0xff]  ;;  %253 = vst [vmem:[%s175_s29 + $0x30] sm:$0xff] %v252_v6  ;;  %255 = vst [vmem:[%s175_s29 + $0x38] sm:$0xff] %v254_v7  ;;  %v258_v9 = vld [vmem:[%s1102_s28 + $0x90] sm:$0xff] }
  0x18   : > { %257 = vst [vmem:[%s175_s29 + $0x40] sm:$0xff] %v256_v8  ;;  %v260_v10 = vld [vmem:[%s1102_s28 + $0xa0] sm:$0xff]  ;;  %v262_v11 = vld [vmem:[%s1102_s28 + $0xb0] sm:$0xff]  ;;  %259 = vst [vmem:[%s175_s29 + $0x48] sm:$0xff] %v258_v9 }
  0x19   : > { %261 = vst [vmem:[%s175_s29 + $0x50] sm:$0xff] %v260_v10  ;;  %263 = vst [vmem:[%s175_s29 + $0x58] sm:$0xff] %v262_v11  ;;  %v264_v12 = vld [vmem:[%s1102_s28 + $0xc0] sm:$0xff]  ;;  %v266_v13 = vld [vmem:[%s1102_s28 + $0xd0] sm:$0xff] }
  0x1a   : > { %v268_v14 = vld [vmem:[%s1102_s28 + $0xe0] sm:$0xff]  ;;  %265 = vst [vmem:[%s175_s29 + $0x60] sm:$0xff] %v264_v12  ;;  %267 = vst [vmem:[%s175_s29 + $0x68] sm:$0xff] %v266_v13  ;;  %v270_v15 = vld [vmem:[%s1102_s28 + $0xf0] sm:$0xff] }
  0x1b   : > { %269 = vst [vmem:[%s175_s29 + $0x70] sm:$0xff] %v268_v14  ;;  %271 = vst [vmem:[%s175_s29 + $0x78] sm:$0xff] %v270_v15 }
  0x1c PF: > { %p876_p8 = scmp.ge.s32.totalorder %s1031_s16, 1  ;;  %p284_p9 = scmp.lt.s32.totalorder %s1031_s16, 3 }
  0x1e   : > { %p285_p10 = pnand %p876_p8, %p284_p9 }
  0x1f   : > { %s291_s30 = sand.u32 (!%p285_p10), 1, %s1015_s12   ;;  %s878_s24 = sshll.u32 (!%p285_p10), %s1023_s14, 1 }
  0x20   : > { %288 = sbr.rel (%p285_p10) target bundleno = 297 (0x129), region = 66  ;;  %s877_s4 = sshll.u32 (!%p285_p10), %s291_s30, 7 }
  0x21   : > { %s1125_s5 = scalar_lea.vmem (!%p285_p10), [#allocation3], %s877_s4  ;;  %p337_p11 = scmp.lt.s32.totalorder (!%p285_p10), %s878_s24, 3 }
  0x22   : > { %s922_s28 = smul.u32 (!%p285_p10), 144, %s291_s30 }
  0x24   : > { %s1164_s29 = scalar_lea.vmem (!%p285_p10), [#allocation4], %s922_s28 }
  0x25   : > { %v1033_v16 = vmov 0   ;;  %v964_v17 = vld [vmem:[%s1125_s5 + $0x74] ss:$8 sps:$4 sm:$0xff]   ;;  %v966_v18 = vld [vmem:[%s1125_s5 + $0x70] ss:$8 sps:$4 sm:$0xff]   ;;  %v988_v33 = vld [vmem:[%s1243_s0] sm:$0xff]   ;;  %v657_v38 = vlaneseq }
  0x26   : > { %549 = vmatprep.mubr.bf16.mxu0 %v1033_v16  ;;  %579 = vmatprep.mubr.bf16.mxu1 %v1033_v16  ;;  %v967_v19 = vld [vmem:[%s1125_s5 + $0x64] ss:$8 sps:$4 sm:$0xff]   ;;  %v969_v20 = vld [vmem:[%s1125_s5 + $0x60] ss:$8 sps:$4 sm:$0xff]   ;;  %v970_v21 = vld [vmem:[%s1125_s5 + $0x54] ss:$8 sps:$4 sm:$0xff]  }
  0x27   : > { %517 = vmatprep.subr.bf16.mxu0 %v964_v17  ;;  %906 = vmatprep.subr.bf16.mxu1 %v964_v17  ;;  %v972_v22 = vld [vmem:[%s1125_s5 + $0x50] ss:$8 sps:$4 sm:$0xff]   ;;  %v973_v23 = vld [vmem:[%s1125_s5 + $0x44] ss:$8 sps:$4 sm:$0xff]   ;;  %v975_v24 = vld [vmem:[%s1125_s5 + $0x40] ss:$8 sps:$4 sm:$0xff]  }
  0x28   : > { %518 = vmatpush1.bf16.msra.mxu0 %v966_v18  ;;  %914 = vmatpush1.bf16.msra.mxu1 %v966_v18  ;;  %v976_v25 = vld [vmem:[%s1125_s5 + $0x34] ss:$8 sps:$4 sm:$0xff]   ;;  %v978_v26 = vld [vmem:[%s1125_s5 + $0x30] ss:$8 sps:$4 sm:$0xff]   ;;  %v979_v27 = vld [vmem:[%s1125_s5 + $0x24] ss:$8 sps:$4 sm:$0xff]  }
  0x29   : > { %519 = vmatprep.subr.bf16.mxu0 %v967_v19  ;;  %907 = vmatprep.subr.bf16.mxu1 %v967_v19  ;;  %v981_v28 = vld [vmem:[%s1125_s5 + $0x20] ss:$8 sps:$4 sm:$0xff]   ;;  %v982_v29 = vld [vmem:[%s1125_s5 + $0x14] ss:$8 sps:$4 sm:$0xff]   ;;  %v984_v30 = vld [vmem:[%s1125_s5 + $0x10] ss:$8 sps:$4 sm:$0xff]  }
  0x2a   : > { %v985_v31 = vld [vmem:[%s1125_s5 + $0x4] ss:$8 sps:$4 sm:$0xff]   ;;  %v987_v32 = vld [vmem:[%s1125_s5] ss:$8 sps:$4 sm:$0xff]   ;;  %v989_v34 = vld [vmem:[%s1243_s0 + $0x18] sm:$0xff]   ;;  %s1255_s24 = smov (!%p337_p11, %s878_s24), 3 }
  0x2b   : > { %v990_v35 = vld [vmem:[%s1243_s0 + $0x8] sm:$0xff]   ;;  %v991_v36 = vld [vmem:[%s1243_s0 + $0x20] ss:$0 sps:$4 sm:$0xff]   ;;  %v992_v37 = vld [vmem:[%s1243_s0 + $0x10] sm:$0xff]   ;;  %v658_v39 = vshrl.u32 %v657_v38, 7  ;;  %s339_s27 = scalar_lea.vmem %s1245_s2, %s1255_s24  ;;  %s905_s12 = sshll.u32 (%p1089_p6), %s1023_s14, 4 }
  0x2c   : > { %520 = vmatpush1.bf16.msra.mxu0 %v969_v20  ;;  %915 = vmatpush1.bf16.msra.mxu1 %v969_v20  ;;  %v655_v41 = vld [vmem:[%s339_s27] sm:$0x3]  ;;  %s1193_s5 = scalar_lea.vmem (%p1089_p6), %s1246_s3, %s905_s12 }
  0x2d   : > { %521 = vmatprep.subr.bf16.mxu0 %v970_v21  ;;  %908 = vmatprep.subr.bf16.mxu1 %v970_v21  ;;  %v659_v40 = vsub.s32 0, %v658_v39  ;;  %v663_v42 = vsub.s32 1, %v658_v39 }
  0x2f   : > { %v660_v43 = vrot.slane %v655_v41, %v659_v40  ;;  %v664_v44 = vrot.slane %v655_v41, %v663_v42 }
  0x30   : > { %522 = vmatpush1.bf16.msra.mxu0 %v972_v22  ;;  %916 = vmatpush1.bf16.msra.mxu1 %v972_v22 }
  0x31   : > { %523 = vmatprep.subr.bf16.mxu0 %v973_v23  ;;  %909 = vmatprep.subr.bf16.mxu1 %v973_v23 }
  0x34   : > { %524 = vmatpush1.bf16.msra.mxu0 %v975_v24  ;;  %917 = vmatpush1.bf16.msra.mxu1 %v975_v24 }
  0x35   : > { %525 = vmatprep.subr.bf16.mxu0 %v976_v25  ;;  %910 = vmatprep.subr.bf16.mxu1 %v976_v25 }
  0x38   : > { %526 = vmatpush1.bf16.msra.mxu0 %v978_v26  ;;  %918 = vmatpush1.bf16.msra.mxu1 %v978_v26 }
  0x39   : > { %527 = vmatprep.subr.bf16.mxu0 %v979_v27  ;;  %911 = vmatprep.subr.bf16.mxu1 %v979_v27 }
  0x3c   : > { %528 = vmatpush1.bf16.msra.mxu0 %v981_v28  ;;  %919 = vmatpush1.bf16.msra.mxu1 %v981_v28 }
  0x3d   : > { %529 = vmatprep.subr.bf16.mxu0 %v982_v29  ;;  %912 = vmatprep.subr.bf16.mxu1 %v982_v29 }
  0x40   : > { %530 = vmatpush1.bf16.msra.mxu0 %v984_v30  ;;  %920 = vmatpush1.bf16.msra.mxu1 %v984_v30 }
  0x41   : > { %531 = vmatprep.subr.bf16.mxu0 %v985_v31  ;;  %913 = vmatprep.subr.bf16.mxu1 %v985_v31 }
  0x44   : > { %532 = vmatpush1.bf16.msra.mxu0 %v987_v32  ;;  %921 = vmatpush1.bf16.msra.mxu1 %v987_v32 }
  0x47   : > { %550 = vmatmul.mubr.bf16.vlgmr.msra.gmra.mxu0 %v988_v33  ;;  %580 = vmatmul.mubr.bf16.vlgmr.msra.gmra.mxu1 %v989_v34 }
  0x48   : > { %559 = vmatprep.mubr.bf16.mxu0 %v1033_v16  ;;  %589 = vmatprep.mubr.bf16.mxu1 %v1033_v16 }
  0x4f   : > { %560 = vmatmul.mubr.bf16.gmra.mxu0 %v990_v35  ;;  %590 = vmatmul.mubr.bf16.gmra.mxu1 %v991_v36 }
  0x50   : > { %569 = vmatprep.mubr.bf16.mxu0 %v1033_v16 }
  0x57   : > { %570 = vmatmul.mubr.bf16.gmra.mxu0 %v992_v37 }
 0x107   : > { %v551_v45 = vpop.f32.mrf.mxu0  ;;  %v581_v46 = vpop.f32.mrf.mxu1 }
 0x108   : > { %v667_v47 = vadd.f32 %v660_v43, %v551_v45  ;;  %v679_v48 = vadd.f32 %v660_v43, %v581_v46 }
 0x109   : > { %v553_v49 = vpop.f32.mrf.mxu0  ;;  %v583_v50 = vpop.f32.mrf.mxu1 }
 0x10a   : > { %685 = vst [vmem:[%s1164_s29] sm:$0xff] %v667_v47  ;;  %v668_v51 = vadd.f32 %v664_v44, %v553_v49  ;;  %697 = vst [vmem:[%s1164_s29 + $0x60] sm:$0xff] %v679_v48  ;;  %v680_v52 = vadd.f32 %v664_v44, %v583_v50 }
 0x10b   : > { %v555_v53 = vpop.f32.mrf.mxu0  ;;  %v585_v54 = vpop.f32.mrf.mxu1 }
 0x10c   : > { %686 = vst [vmem:[%s1164_s29 + $0x8] sm:$0xff] %v668_v51  ;;  %v669_v55 = vadd.f32 %v660_v43, %v555_v53  ;;  %698 = vst [vmem:[%s1164_s29 + $0x68] sm:$0xff] %v680_v52  ;;  %v681_v56 = vadd.f32 %v660_v43, %v585_v54 }
 0x10d   : > { %v557_v57 = vpop.f32.mrf.mxu0  ;;  %v587_v58 = vpop.f32.mrf.mxu1 }
 0x10e   : > { %687 = vst [vmem:[%s1164_s29 + $0x10] sm:$0xff] %v669_v55  ;;  %v670_v59 = vadd.f32 %v664_v44, %v557_v57  ;;  %699 = vst [vmem:[%s1164_s29 + $0x70] sm:$0xff] %v681_v56  ;;  %v682_v60 = vadd.f32 %v664_v44, %v587_v58 }
 0x10f   : > { %v561_v61 = vpop.f32.mrf.mxu0  ;;  %v591_v62 = vpop.f32.mrf.mxu1 }
 0x110   : > { %688 = vst [vmem:[%s1164_s29 + $0x18] sm:$0xff] %v670_v59  ;;  %v671_v63 = vadd.f32 %v660_v43, %v561_v61  ;;  %700 = vst [vmem:[%s1164_s29 + $0x78] sm:$0xff] %v682_v60  ;;  %v683_v0 = vadd.f32 %v660_v43, %v591_v62 }
 0x111   : > { %v563_v1 = vpop.f32.mrf.mxu0  ;;  %v593_v2 = vpop.f32.mrf.mxu1  ;;  %v728_v19 = vld [vmem:[%s1164_s29] sm:$0xff] (%p1089_p6) }
 0x112   : > { %689 = vst [vmem:[%s1164_s29 + $0x20] sm:$0xff] %v671_v63  ;;  %v672_v3 = vadd.f32 %v664_v44, %v563_v1  ;;  %701 = vst [vmem:[%s1164_s29 + $0x80] sm:$0xff] %v683_v0  ;;  %v684_v4 = vadd.f32 %v664_v44, %v593_v2  ;;  %v752_v31 = vld [vmem:[%s1164_s29 + $0x60] sm:$0xff] (%p1089_p6) }
 0x113   : > { %v565_v5 = vpop.f32.mrf.mxu0  ;;  %v595_v6 = vpop.f32.mrf.mxu1  ;;  %v730_v20 = vld [vmem:[%s1164_s29 + $0x8] sm:$0xff] (%p1089_p6)  ;;  %729 = vst [vmem:[%s1193_s5] sm:$0xff] (%p1089_p6), %v728_v19  ;;  %753 = vst [vmem:[%s1193_s5 + $0xc0] sm:$0xff] (%p1089_p6), %v752_v31 }
 0x114   : > { %690 = vst [vmem:[%s1164_s29 + $0x28] sm:$0xff] %v672_v3  ;;  %v673_v7 = vadd.f32 %v660_v43, %v565_v5  ;;  %702 = vst [vmem:[%s1164_s29 + $0x88] sm:$0xff] %v684_v4  ;;  %v754_v32 = vld [vmem:[%s1164_s29 + $0x68] sm:$0xff] (%p1089_p6) }
 0x115   : > { %v567_v8 = vpop.f32.mrf.mxu0  ;;  %v596_v9 = vpop.f32.mrf.mxu1  ;;  %v732_v21 = vld [vmem:[%s1164_s29 + $0x10] sm:$0xff] (%p1089_p6)  ;;  %731 = vst [vmem:[%s1193_s5 + $0x8] sm:$0xff] (%p1089_p6), %v730_v20  ;;  %755 = vst [vmem:[%s1193_s5 + $0xc8] sm:$0xff] (%p1089_p6), %v754_v32 }
 0x116   : > { %691 = vst [vmem:[%s1164_s29 + $0x30] sm:$0xff] %v673_v7  ;;  %v674_v10 = vadd.f32 %v664_v44, %v567_v8  ;;  %733 = vst [vmem:[%s1193_s5 + $0x20] sm:$0xff] (%p1089_p6), %v732_v21  ;;  %v756_v33 = vld [vmem:[%s1164_s29 + $0x70] sm:$0xff] (%p1089_p6) }
 0x117   : > { %v571_v11 = vpop.f32.mrf.mxu0  ;;  %v734_v22 = vld [vmem:[%s1164_s29 + $0x18] sm:$0xff] (%p1089_p6)  ;;  %757 = vst [vmem:[%s1193_s5 + $0xe0] sm:$0xff] (%p1089_p6), %v756_v33 }
 0x118   : > { %692 = vst [vmem:[%s1164_s29 + $0x38] sm:$0xff] %v674_v10  ;;  %v675_v12 = vadd.f32 %v660_v43, %v571_v11  ;;  %735 = vst [vmem:[%s1193_s5 + $0x28] sm:$0xff] (%p1089_p6), %v734_v22  ;;  %v758_v34 = vld [vmem:[%s1164_s29 + $0x78] sm:$0xff] (%p1089_p6) }
 0x119   : > { %v573_v13 = vpop.f32.mrf.mxu0  ;;  %v736_v23 = vld [vmem:[%s1164_s29 + $0x20] sm:$0xff] (%p1089_p6)  ;;  %759 = vst [vmem:[%s1193_s5 + $0xe8] sm:$0xff] (%p1089_p6), %v758_v34 }
 0x11a   : > { %693 = vst [vmem:[%s1164_s29 + $0x40] sm:$0xff] %v675_v12  ;;  %v676_v14 = vadd.f32 %v664_v44, %v573_v13  ;;  %737 = vst [vmem:[%s1193_s5 + $0x40] sm:$0xff] (%p1089_p6), %v736_v23  ;;  %v760_v35 = vld [vmem:[%s1164_s29 + $0x80] sm:$0xff] (%p1089_p6) }
 0x11b   : > { %v575_v15 = vpop.f32.mrf.mxu0  ;;  %v738_v24 = vld [vmem:[%s1164_s29 + $0x28] sm:$0xff] (%p1089_p6)  ;;  %761 = vst [vmem:[%s1193_s5 + $0x100] sm:$0xff] (%p1089_p6), %v760_v35 }
 0x11c   : > { %694 = vst [vmem:[%s1164_s29 + $0x48] sm:$0xff] %v676_v14  ;;  %v677_v16 = vadd.f32 %v660_v43, %v575_v15  ;;  %709 = sbr.rel (!%p1089_p6) target bundleno = 297 (0x129), region = 82  ;;  %739 = vst [vmem:[%s1193_s5 + $0x48] sm:$0xff] (%p1089_p6), %v738_v24  ;;  %v762_v36 = vld [vmem:[%s1164_s29 + $0x88] sm:$0xff] (%p1089_p6) }
 0x11d   : > { %v577_v17 = vpop.f32.mrf.mxu0  ;;  %v740_v25 = vld [vmem:[%s1164_s29 + $0x30] sm:$0xff] (%p1089_p6)  ;;  %763 = vst [vmem:[%s1193_s5 + $0x108] sm:$0xff] (%p1089_p6), %v762_v36 }
 0x11e   : > { %695 = vst [vmem:[%s1164_s29 + $0x50] sm:$0xff] %v677_v16  ;;  %v678_v18 = vadd.f32 %v664_v44, %v577_v17  ;;  %741 = vst [vmem:[%s1193_s5 + $0x60] sm:$0xff] (%p1089_p6), %v740_v25 }
 0x11f   : > { %v742_v26 = vld [vmem:[%s1164_s29 + $0x38] sm:$0xff] (%p1089_p6) }
 0x120   : > { %696 = vst [vmem:[%s1164_s29 + $0x58] sm:$0xff] %v678_v18  ;;  %743 = vst [vmem:[%s1193_s5 + $0x68] sm:$0xff] (%p1089_p6), %v742_v26 }
 0x121   : > { %v744_v27 = vld [vmem:[%s1164_s29 + $0x40] sm:$0xff] }
 0x122   : > { %745 = vst [vmem:[%s1193_s5 + $0x80] sm:$0xff] %v744_v27 }
 0x123   : > { %v746_v28 = vld [vmem:[%s1164_s29 + $0x48] sm:$0xff] }
 0x124   : > { %747 = vst [vmem:[%s1193_s5 + $0x88] sm:$0xff] %v746_v28 }
 0x125   : > { %v748_v29 = vld [vmem:[%s1164_s29 + $0x50] sm:$0xff] }
 0x126   : > { %749 = vst [vmem:[%s1193_s5 + $0xa0] sm:$0xff] %v748_v29 }
 0x127   : > { %v750_v30 = vld [vmem:[%s1164_s29 + $0x58] sm:$0xff] }
 0x128   : > { %751 = vst [vmem:[%s1193_s5 + $0xa8] sm:$0xff] %v750_v30 }
 0x129 PF: > { %s13_s16 = sadd.s32 1, %s1031_s16   ;;  %s1248_s12 = smov %s1019_s13 }
 0x12a   : > { %p10_p12 = scmp.ge.s32.totalorder %s13_s16, 4   ;;  %s1249_s13 = smov %s1094_s22 }
 0x12b   : > { %s1250_s14 = smov %s1027_s15  ;;  %s1251_s15 = smov %s1253_s17 }
 0x12c   :  { %12 = sbr.rel (!%p10_p12) target bundleno = 3 (0x3), region = 142 }

// kernel: decoder_rnn_forward.5
= control target key start
LH: loop header
LB: loop body
LE: loop exit
PB: predicated region body
PF: predicated region fallthrough
CT: control target
= control target key end

     0   :  { %v445_v1 = vmov 0   ;;  %v328_v22 = vlaneseq  ;;  %s586_s1 = inlined_call_operand.vmem [shape: bf16[128,256], index: 1, kind: input, shape index: {}]   ;;  %s587_s0 = inlined_call_operand.vmem [shape: bf16[72,128], index: 0, kind: input, shape index: {}]   ;;  %s588_s2 = inlined_call_operand.vmem [shape: f32[1,256], index: 2, kind: input, shape index: {}]   ;;  %s589_s3 = inlined_call_operand.vmem [shape: f32[72,256], index: 3, kind: output, shape index: {}]  }
   0x1   :  { %v416_v0 = vld [vmem:[%s586_s1 + $0x74] ss:$8 sps:$4 sm:$0xff]   ;;  %220 = vmatprep.mubr.bf16.mxu0 %v445_v1  ;;  %250 = vmatprep.mubr.bf16.mxu1 %v445_v1  ;;  %v418_v2 = vld [vmem:[%s586_s1 + $0x70] ss:$8 sps:$4 sm:$0xff]   ;;  %v419_v3 = vld [vmem:[%s586_s1 + $0x64] ss:$8 sps:$4 sm:$0xff]  }
   0x2   :  { %188 = vmatprep.subr.bf16.mxu0 %v416_v0  ;;  %399 = vmatprep.subr.bf16.mxu1 %v416_v0  ;;  %v421_v4 = vld [vmem:[%s586_s1 + $0x60] ss:$8 sps:$4 sm:$0xff]   ;;  %v422_v5 = vld [vmem:[%s586_s1 + $0x54] ss:$8 sps:$4 sm:$0xff]   ;;  %v424_v6 = vld [vmem:[%s586_s1 + $0x50] ss:$8 sps:$4 sm:$0xff]  }
   0x3   :  { %189 = vmatpush1.bf16.msra.mxu0 %v418_v2  ;;  %407 = vmatpush1.bf16.msra.mxu1 %v418_v2  ;;  %v425_v7 = vld [vmem:[%s586_s1 + $0x44] ss:$8 sps:$4 sm:$0xff]   ;;  %v427_v8 = vld [vmem:[%s586_s1 + $0x40] ss:$8 sps:$4 sm:$0xff]   ;;  %v428_v9 = vld [vmem:[%s586_s1 + $0x34] ss:$8 sps:$4 sm:$0xff]  }
   0x4   :  { %190 = vmatprep.subr.bf16.mxu0 %v419_v3  ;;  %400 = vmatprep.subr.bf16.mxu1 %v419_v3  ;;  %v430_v10 = vld [vmem:[%s586_s1 + $0x30] ss:$8 sps:$4 sm:$0xff]   ;;  %v431_v11 = vld [vmem:[%s586_s1 + $0x24] ss:$8 sps:$4 sm:$0xff]   ;;  %v433_v12 = vld [vmem:[%s586_s1 + $0x20] ss:$8 sps:$4 sm:$0xff]  }
   0x5   :  { %v434_v13 = vld [vmem:[%s586_s1 + $0x14] ss:$8 sps:$4 sm:$0xff]   ;;  %v436_v14 = vld [vmem:[%s586_s1 + $0x10] ss:$8 sps:$4 sm:$0xff]   ;;  %v437_v15 = vld [vmem:[%s586_s1 + $0x4] ss:$8 sps:$4 sm:$0xff]  }
   0x6   :  { %v439_v16 = vld [vmem:[%s586_s1] ss:$8 sps:$4 sm:$0xff]   ;;  %v441_v18 = vld [vmem:[%s587_s0 + $0x18] sm:$0xff]   ;;  %v444_v21 = vld [vmem:[%s587_s0 + $0x10] sm:$0xff]   ;;  %v329_v23 = vshrl.u32 %v328_v22, 7 }
   0x7   :  { %191 = vmatpush1.bf16.msra.mxu0 %v421_v4  ;;  %408 = vmatpush1.bf16.msra.mxu1 %v421_v4  ;;  %v440_v17 = vld [vmem:[%s587_s0] sm:$0xff]   ;;  %v442_v19 = vld [vmem:[%s587_s0 + $0x8] sm:$0xff]  }
   0x8   :  { %192 = vmatprep.subr.bf16.mxu0 %v422_v5  ;;  %401 = vmatprep.subr.bf16.mxu1 %v422_v5  ;;  %v443_v20 = vld [vmem:[%s587_s0 + $0x20] ss:$0 sps:$4 sm:$0xff]   ;;  %v330_v24 = vsub.s32 0, %v329_v23  ;;  %v334_v26 = vsub.s32 1, %v329_v23 }
   0x9   :  { %v326_v25 = vld [vmem:[%s588_s2] sm:$0x3] }
   0xa   :  { %v331_v27 = vrot.slane %v326_v25, %v330_v24  ;;  %v335_v28 = vrot.slane %v326_v25, %v334_v26 }
   0xb   :  { %193 = vmatpush1.bf16.msra.mxu0 %v424_v6  ;;  %409 = vmatpush1.bf16.msra.mxu1 %v424_v6 }
   0xc   :  { %194 = vmatprep.subr.bf16.mxu0 %v425_v7  ;;  %402 = vmatprep.subr.bf16.mxu1 %v425_v7 }
   0xf   :  { %195 = vmatpush1.bf16.msra.mxu0 %v427_v8  ;;  %410 = vmatpush1.bf16.msra.mxu1 %v427_v8 }
  0x10   :  { %196 = vmatprep.subr.bf16.mxu0 %v428_v9  ;;  %403 = vmatprep.subr.bf16.mxu1 %v428_v9 }
  0x13   :  { %197 = vmatpush1.bf16.msra.mxu0 %v430_v10  ;;  %411 = vmatpush1.bf16.msra.mxu1 %v430_v10 }
  0x14   :  { %198 = vmatprep.subr.bf16.mxu0 %v431_v11  ;;  %404 = vmatprep.subr.bf16.mxu1 %v431_v11 }
  0x17   :  { %199 = vmatpush1.bf16.msra.mxu0 %v433_v12  ;;  %412 = vmatpush1.bf16.msra.mxu1 %v433_v12 }
  0x18   :  { %200 = vmatprep.subr.bf16.mxu0 %v434_v13  ;;  %405 = vmatprep.subr.bf16.mxu1 %v434_v13 }
  0x1b   :  { %201 = vmatpush1.bf16.msra.mxu0 %v436_v14  ;;  %413 = vmatpush1.bf16.msra.mxu1 %v436_v14 }
  0x1c   :  { %202 = vmatprep.subr.bf16.mxu0 %v437_v15  ;;  %406 = vmatprep.subr.bf16.mxu1 %v437_v15 }
  0x1f   :  { %203 = vmatpush1.bf16.msra.mxu0 %v439_v16  ;;  %414 = vmatpush1.bf16.msra.mxu1 %v439_v16 }
  0x22   :  { %221 = vmatmul.mubr.bf16.vlgmr.msra.gmra.mxu0 %v440_v17  ;;  %251 = vmatmul.mubr.bf16.vlgmr.msra.gmra.mxu1 %v441_v18 }
  0x23   :  { %230 = vmatprep.mubr.bf16.mxu0 %v445_v1  ;;  %260 = vmatprep.mubr.bf16.mxu1 %v445_v1 }
  0x2a   :  { %231 = vmatmul.mubr.bf16.gmra.mxu0 %v442_v19  ;;  %261 = vmatmul.mubr.bf16.gmra.mxu1 %v443_v20 }
  0x2b   :  { %240 = vmatprep.mubr.bf16.mxu0 %v445_v1 }
  0x32   :  { %241 = vmatmul.mubr.bf16.gmra.mxu0 %v444_v21 }
  0xe2   :  { %v222_v29 = vpop.f32.mrf.mxu0  ;;  %v252_v30 = vpop.f32.mrf.mxu1 }
  0xe3   :  { %v338_v31 = vadd.f32 %v331_v27, %v222_v29  ;;  %v350_v32 = vadd.f32 %v331_v27, %v252_v30 }
  0xe4   :  { %v224_v33 = vpop.f32.mrf.mxu0  ;;  %v254_v34 = vpop.f32.mrf.mxu1 }
  0xe5   :  { %356 = vst [vmem:[%s589_s3] sm:$0xff] %v338_v31  ;;  %v339_v35 = vadd.f32 %v335_v28, %v224_v33  ;;  %368 = vst [vmem:[%s589_s3 + $0x60] sm:$0xff] %v350_v32  ;;  %v351_v36 = vadd.f32 %v335_v28, %v254_v34 }
  0xe6   :  { %v226_v37 = vpop.f32.mrf.mxu0  ;;  %v256_v38 = vpop.f32.mrf.mxu1 }
  0xe7   :  { %357 = vst [vmem:[%s589_s3 + $0x8] sm:$0xff] %v339_v35  ;;  %v340_v39 = vadd.f32 %v331_v27, %v226_v37  ;;  %369 = vst [vmem:[%s589_s3 + $0x68] sm:$0xff] %v351_v36  ;;  %v352_v40 = vadd.f32 %v331_v27, %v256_v38 }
  0xe8   :  { %v228_v41 = vpop.f32.mrf.mxu0  ;;  %v258_v42 = vpop.f32.mrf.mxu1 }
  0xe9   :  { %358 = vst [vmem:[%s589_s3 + $0x10] sm:$0xff] %v340_v39  ;;  %v341_v43 = vadd.f32 %v335_v28, %v228_v41  ;;  %370 = vst [vmem:[%s589_s3 + $0x70] sm:$0xff] %v352_v40  ;;  %v353_v44 = vadd.f32 %v335_v28, %v258_v42 }
  0xea   :  { %v232_v45 = vpop.f32.mrf.mxu0  ;;  %v262_v46 = vpop.f32.mrf.mxu1 }
  0xeb   :  { %359 = vst [vmem:[%s589_s3 + $0x18] sm:$0xff] %v341_v43  ;;  %v342_v47 = vadd.f32 %v331_v27, %v232_v45  ;;  %371 = vst [vmem:[%s589_s3 + $0x78] sm:$0xff] %v353_v44  ;;  %v354_v48 = vadd.f32 %v331_v27, %v262_v46 }
  0xec   :  { %v234_v49 = vpop.f32.mrf.mxu0  ;;  %v264_v50 = vpop.f32.mrf.mxu1 }
  0xed   :  { %360 = vst [vmem:[%s589_s3 + $0x20] sm:$0xff] %v342_v47  ;;  %v343_v51 = vadd.f32 %v335_v28, %v234_v49  ;;  %372 = vst [vmem:[%s589_s3 + $0x80] sm:$0xff] %v354_v48  ;;  %v355_v52 = vadd.f32 %v335_v28, %v264_v50 }
  0xee   :  { %v236_v53 = vpop.f32.mrf.mxu0  ;;  %v266_v54 = vpop.f32.mrf.mxu1 }
  0xef   :  { %361 = vst [vmem:[%s589_s3 + $0x28] sm:$0xff] %v343_v51  ;;  %v344_v55 = vadd.f32 %v331_v27, %v236_v53  ;;  %373 = vst [vmem:[%s589_s3 + $0x88] sm:$0xff] %v355_v52 }
  0xf0   :  { %v238_v56 = vpop.f32.mrf.mxu0  ;;  %v267_v57 = vpop.f32.mrf.mxu1 }
  0xf1   :  { %362 = vst [vmem:[%s589_s3 + $0x30] sm:$0xff] %v344_v55  ;;  %v345_v58 = vadd.f32 %v335_v28, %v238_v56 }
  0xf2   :  { %v242_v59 = vpop.f32.mrf.mxu0 }
  0xf3   :  { %363 = vst [vmem:[%s589_s3 + $0x38] sm:$0xff] %v345_v58  ;;  %v346_v60 = vadd.f32 %v331_v27, %v242_v59 }
  0xf4   :  { %v244_v61 = vpop.f32.mrf.mxu0 }
  0xf5   :  { %364 = vst [vmem:[%s589_s3 + $0x40] sm:$0xff] %v346_v60  ;;  %v347_v62 = vadd.f32 %v335_v28, %v244_v61 }
  0xf6   :  { %v246_v63 = vpop.f32.mrf.mxu0 }
  0xf7   :  { %365 = vst [vmem:[%s589_s3 + $0x48] sm:$0xff] %v347_v62  ;;  %v348_v0 = vadd.f32 %v331_v27, %v246_v63 }
  0xf8   :  { %v248_v1 = vpop.f32.mrf.mxu0 }
  0xf9   :  { %366 = vst [vmem:[%s589_s3 + $0x50] sm:$0xff] %v348_v0  ;;  %v349_v2 = vadd.f32 %v335_v28, %v248_v1 }
  0xfb   :  { %367 = vst [vmem:[%s589_s3 + $0x58] sm:$0xff] %v349_v2 }

// kernel: decoder_rnn_forward.4
= control target key start
LH: loop header
LB: loop body
LE: loop exit
PB: predicated region body
PF: predicated region fallthrough
CT: control target
= control target key end

     0   :  { %s1542_s18 = smov 0   ;;  %s1865_s0 = inlined_call_operand.vmem [shape: f32[9,8,512], index: 0, kind: input, shape index: {}]   ;;  %s1866_s1 = inlined_call_operand.vmem [shape: bf16[128,512], index: 1, kind: input, shape index: {}]   ;;  %s1867_s2 = inlined_call_operand.vmem [shape: bf16[128,512], index: 2, kind: input, shape index: {}]   ;;  %s1868_s3 = inlined_call_operand.vmem [shape: bf16[128,512], index: 3, kind: input, shape index: {}]   ;;  %s1869_s4 = inlined_call_operand.vmem [shape: f32[1,512], index: 4, kind: input, shape index: {}]   ;;  %s1870_s5 = inlined_call_operand.vmem [shape: bf16[9,8,128], index: 5, kind: output, shape index: {}]  }
   0x1 LB: > { %s1202_s19 = sadd.s32 4294967295, %s1508_s18   ;;  %p1206_p0 = scmp.ge.s32.totalorder %s1508_s18, 1  ;;  %s1508_s18 = sphi %s1542_s18, %s15_s18  }
   0x2   : > { %p187_p1 = scmp.lt.s32.totalorder %s1508_s18, 10 }
   0x4   : > { %p188_p2 = pnand %p1206_p0, %p187_p1 }
   0x5   : > { %p214_p3 = scmp.lt.s32.totalorder (!%p188_p2), %s1202_s19, 8  ;;  %p1210_p4 = scmp.ne.s32.totalorder (!%p188_p2), %s1202_s19, 0 }
   0x6   : > { %191 = sbr.rel (%p188_p2) target bundleno = 559 (0x22f), region = 40 }
   0xb   : > { %s215_s20 = scalar_select %p214_p3, %s1202_s19, 8 }
   0xc   : > { %227 = sbr.rel (%p1210_p4) target bundleno = 20 (0x14), region = 44 }
   0xd   : > { %s1315_s21 = sshll.u32 %s215_s20, 5  ;;  %s1209_s22 = sshll.u32 %s215_s20, 2 }
   0xe   : > { %s1553_s25 = scalar_lea.vmem %s1865_s0, %s1315_s21  ;;  %s1558_s28 = scalar_lea.vmem %s1870_s5, %s1209_s22 }
  0x11   : > { %v1510_v0 = vmov 0.0  }
  0x12   : > { %228 = vst [vmem:[#allocation2] sm:$0xff] %v1510_v0  ;;  %229 = vst [vmem:[#allocation3] sm:$0xff] %v1510_v0 }
  0x13   : > { %230 = vst [vmem:[#allocation4] sm:$0xff] %v1510_v0  ;;  %231 = vst [vmem:[#allocation5] sm:$0xff] %v1510_v0 }
  0x14 PF: > { %v1326_v1 = vld [vmem:[%s1866_s1 + $0xe4] ss:$16 sps:$4 sm:$0xff]   ;;  %v1328_v2 = vld [vmem:[%s1866_s1 + $0xe0] ss:$16 sps:$4 sm:$0xff]   ;;  %v1511_v3 = vmov 0  }
  0x15   : > { %462 = vmatprep.mubr.bf16.mxu0 %v1511_v3  ;;  %503 = vmatprep.mubr.bf16.mxu1 %v1511_v3  ;;  %v1329_v4 = vld [vmem:[%s1866_s1 + $0xc4] ss:$16 sps:$4 sm:$0xff]   ;;  %v1331_v5 = vld [vmem:[%s1866_s1 + $0xc0] ss:$16 sps:$4 sm:$0xff]   ;;  %v1337_v7 = vld [vmem:[%s1866_s1 + $0xec] ss:$16 sps:$4 sm:$0xff]  }
  0x16   : > { %430 = vmatprep.subr.bf16.mxu0 %v1326_v1  ;;  %v1332_v6 = vld [vmem:[%s1866_s1 + $0xa4] ss:$16 sps:$4 sm:$0xff]   ;;  %v1340_v8 = vld [vmem:[%s1866_s1 + $0xe8] ss:$16 sps:$4 sm:$0xff]   ;;  %v1334_v9 = vld [vmem:[%s1866_s1 + $0xa0] ss:$16 sps:$4 sm:$0xff]   ;;  %471 = vmatprep.subr.bf16.mxu1 %v1337_v7 }
  0x17   : > { %431 = vmatpush1.bf16.msra.mxu0 %v1328_v2  ;;  %v1335_v10 = vld [vmem:[%s1866_s1 + $0x84] ss:$16 sps:$4 sm:$0xff]   ;;  %472 = vmatpush1.bf16.msra.mxu1 %v1340_v8  ;;  %v1343_v11 = vld [vmem:[%s1866_s1 + $0xcc] ss:$16 sps:$4 sm:$0xff]   ;;  %v1346_v12 = vld [vmem:[%s1866_s1 + $0xc8] ss:$16 sps:$4 sm:$0xff]  }
  0x18   : > { %432 = vmatprep.subr.bf16.mxu0 %v1329_v4  ;;  %473 = vmatprep.subr.bf16.mxu1 %v1343_v11  ;;  %v1339_v13 = vld [vmem:[%s1866_s1 + $0x80] ss:$16 sps:$4 sm:$0xff]   ;;  %v1341_v14 = vld [vmem:[%s1866_s1 + $0x64] ss:$16 sps:$4 sm:$0xff]   ;;  %v1349_v15 = vld [vmem:[%s1866_s1 + $0xac] ss:$16 sps:$4 sm:$0xff]  }
  0x19   : > { %v1352_v16 = vld [vmem:[%s1866_s1 + $0xa8] ss:$16 sps:$4 sm:$0xff]   ;;  %v1355_v17 = vld [vmem:[%s1866_s1 + $0x8c] ss:$16 sps:$4 sm:$0xff]   ;;  %v1345_v18 = vld [vmem:[%s1866_s1 + $0x60] ss:$16 sps:$4 sm:$0xff]  }
  0x1a   : > { %v1347_v19 = vld [vmem:[%s1866_s1 + $0x44] ss:$16 sps:$4 sm:$0xff]   ;;  %v1358_v20 = vld [vmem:[%s1866_s1 + $0x88] ss:$16 sps:$4 sm:$0xff]   ;;  %v1361_v21 = vld [vmem:[%s1866_s1 + $0x6c] ss:$16 sps:$4 sm:$0xff]  }
  0x1b   : > { %433 = vmatpush1.bf16.msra.mxu0 %v1331_v5  ;;  %474 = vmatpush1.bf16.msra.mxu1 %v1346_v12  ;;  %v1351_v22 = vld [vmem:[%s1866_s1 + $0x40] ss:$16 sps:$4 sm:$0xff]   ;;  %v1353_v23 = vld [vmem:[%s1866_s1 + $0x24] ss:$16 sps:$4 sm:$0xff]   ;;  %v1364_v24 = vld [vmem:[%s1866_s1 + $0x68] ss:$16 sps:$4 sm:$0xff]  }
  0x1c   : > { %434 = vmatprep.subr.bf16.mxu0 %v1332_v6  ;;  %475 = vmatprep.subr.bf16.mxu1 %v1349_v15  ;;  %v1365_v25 = vld [vmem:[%s1866_s1 + $0x4c] ss:$16 sps:$4 sm:$0xff]   ;;  %v1357_v26 = vld [vmem:[%s1866_s1 + $0x20] ss:$16 sps:$4 sm:$0xff]   ;;  %v1359_v27 = vld [vmem:[%s1866_s1 + $0x4] ss:$16 sps:$4 sm:$0xff]  }
  0x1d   : > { %v1367_v28 = vld [vmem:[%s1866_s1 + $0x48] ss:$16 sps:$4 sm:$0xff]   ;;  %v1368_v29 = vld [vmem:[%s1866_s1 + $0x2c] ss:$16 sps:$4 sm:$0xff]   ;;  %v1363_v30 = vld [vmem:[%s1866_s1] ss:$16 sps:$4 sm:$0xff]  }
  0x1e   : > { %v236_v31 = vld [vmem:[#allocation2] sm:$0xff]  ;;  %v1370_v32 = vld [vmem:[%s1866_s1 + $0x28] ss:$16 sps:$4 sm:$0xff]   ;;  %v1371_v33 = vld [vmem:[%s1866_s1 + $0xc] ss:$16 sps:$4 sm:$0xff]  }
  0x1f   : > { %435 = vmatpush1.bf16.msra.mxu0 %v1334_v9  ;;  %476 = vmatpush1.bf16.msra.mxu1 %v1352_v16  ;;  %v1376_v34 = vld [vmem:[%s1868_s3 + $0xe4] ss:$16 sps:$4 sm:$0xff]   ;;  %v1374_v35 = vld [vmem:[%s1868_s3 + $0xe0] ss:$16 sps:$4 sm:$0xff]   ;;  %v237_v36 = vpack.c.bf16 %v236_v31, %v236_v31  ;;  %v1373_v37 = vld [vmem:[%s1866_s1 + $0x8] ss:$16 sps:$4 sm:$0xff]  }
  0x20   : > { %436 = vmatprep.subr.bf16.mxu0 %v1335_v10  ;;  %477 = vmatprep.subr.bf16.mxu1 %v1355_v17  ;;  %v1379_v38 = vld [vmem:[%s1868_s3 + $0xc4] ss:$16 sps:$4 sm:$0xff]   ;;  %v1382_v39 = vld [vmem:[%s1868_s3 + $0xec] ss:$16 sps:$4 sm:$0xff]   ;;  %v1377_v40 = vld [vmem:[%s1868_s3 + $0xc0] ss:$16 sps:$4 sm:$0xff]  }
  0x21   : > { %v1380_v41 = vld [vmem:[%s1868_s3 + $0xe8] ss:$16 sps:$4 sm:$0xff]   ;;  %v1385_v42 = vld [vmem:[%s1868_s3 + $0xa4] ss:$16 sps:$4 sm:$0xff]   ;;  %v1388_v43 = vld [vmem:[%s1868_s3 + $0xcc] ss:$16 sps:$4 sm:$0xff]  }
  0x22   : > { %v1383_v44 = vld [vmem:[%s1868_s3 + $0xa0] ss:$16 sps:$4 sm:$0xff]   ;;  %v1386_v45 = vld [vmem:[%s1868_s3 + $0xc8] ss:$16 sps:$4 sm:$0xff]   ;;  %v1391_v46 = vld [vmem:[%s1868_s3 + $0x84] ss:$16 sps:$4 sm:$0xff]  }
  0x23   : > { %437 = vmatpush1.bf16.msra.mxu0 %v1339_v13  ;;  %478 = vmatpush1.bf16.msra.mxu1 %v1358_v20  ;;  %v1389_v47 = vld [vmem:[%s1868_s3 + $0x80] ss:$16 sps:$4 sm:$0xff]   ;;  %v1394_v48 = vld [vmem:[%s1868_s3 + $0xac] ss:$16 sps:$4 sm:$0xff]   ;;  %v1392_v49 = vld [vmem:[%s1868_s3 + $0xa8] ss:$16 sps:$4 sm:$0xff]  }
  0x24   : > { %438 = vmatprep.subr.bf16.mxu0 %v1341_v14  ;;  %479 = vmatprep.subr.bf16.mxu1 %v1361_v21  ;;  %v1397_v50 = vld [vmem:[%s1868_s3 + $0x64] ss:$16 sps:$4 sm:$0xff]   ;;  %v1395_v51 = vld [vmem:[%s1868_s3 + $0x60] ss:$16 sps:$4 sm:$0xff]   ;;  %v1400_v52 = vld [vmem:[%s1868_s3 + $0x8c] ss:$16 sps:$4 sm:$0xff]  }
  0x25   : > { %v1398_v53 = vld [vmem:[%s1868_s3 + $0x88] ss:$16 sps:$4 sm:$0xff]   ;;  %v1403_v54 = vld [vmem:[%s1868_s3 + $0x44] ss:$16 sps:$4 sm:$0xff]   ;;  %v1401_v55 = vld [vmem:[%s1868_s3 + $0x40] ss:$16 sps:$4 sm:$0xff]  }
  0x26   : > { %v1406_v56 = vld [vmem:[%s1868_s3 + $0x6c] ss:$16 sps:$4 sm:$0xff]   ;;  %v1404_v57 = vld [vmem:[%s1868_s3 + $0x68] ss:$16 sps:$4 sm:$0xff]   ;;  %v1409_v58 = vld [vmem:[%s1868_s3 + $0x24] ss:$16 sps:$4 sm:$0xff]  }
  0x27   : > { %439 = vmatpush1.bf16.msra.mxu0 %v1345_v18  ;;  %480 = vmatpush1.bf16.msra.mxu1 %v1364_v24  ;;  %v1407_v59 = vld [vmem:[%s1868_s3 + $0x20] ss:$16 sps:$4 sm:$0xff]   ;;  %v1412_v60 = vld [vmem:[%s1868_s3 + $0x4c] ss:$16 sps:$4 sm:$0xff]   ;;  %v1410_v61 = vld [vmem:[%s1868_s3 + $0x48] ss:$16 sps:$4 sm:$0xff]  }
  0x28   : > { %440 = vmatprep.subr.bf16.mxu0 %v1347_v19  ;;  %481 = vmatprep.subr.bf16.mxu1 %v1365_v25  ;;  %v1415_v62 = vld [vmem:[%s1868_s3 + $0x4] ss:$16 sps:$4 sm:$0xff]   ;;  %v1413_v63 = vld [vmem:[%s1868_s3] ss:$16 sps:$4 sm:$0xff]   ;;  %v1418_v0 = vld [vmem:[%s1868_s3 + $0x2c] ss:$16 sps:$4 sm:$0xff]  }
  0x29   : > { %v1416_v1 = vld [vmem:[%s1868_s3 + $0x28] ss:$16 sps:$4 sm:$0xff]   ;;  %v576_v2 = vld [vmem:[#allocation4] sm:$0xff]  ;;  %v1421_v5 = vld [vmem:[%s1868_s3 + $0xc] ss:$16 sps:$4 sm:$0xff]  }
  0x2a   : > { %v577_v4 = vpack.c.bf16 %v576_v2, %v576_v2  ;;  %v1419_v6 = vld [vmem:[%s1868_s3 + $0x8] ss:$16 sps:$4 sm:$0xff]   ;;  %v1424_v7 = vld [vmem:[%s1867_s2 + $0xe4] ss:$16 sps:$4 sm:$0xff]   ;;  %v1427_v8 = vld [vmem:[%s1867_s2 + $0xec] ss:$16 sps:$4 sm:$0xff]  }
  0x2b   : > { %441 = vmatpush1.bf16.msra.mxu0 %v1351_v22  ;;  %482 = vmatpush1.bf16.msra.mxu1 %v1367_v28  ;;  %v1422_v9 = vld [vmem:[%s1867_s2 + $0xe0] ss:$16 sps:$4 sm:$0xff]   ;;  %v1425_v10 = vld [vmem:[%s1867_s2 + $0xe8] ss:$16 sps:$4 sm:$0xff]   ;;  %v1430_v11 = vld [vmem:[%s1867_s2 + $0xc4] ss:$16 sps:$4 sm:$0xff]  }
  0x2c   : > { %442 = vmatprep.subr.bf16.mxu0 %v1353_v23  ;;  %483 = vmatprep.subr.bf16.mxu1 %v1368_v29  ;;  %v1433_v12 = vld [vmem:[%s1867_s2 + $0xcc] ss:$16 sps:$4 sm:$0xff]   ;;  %v1428_v13 = vld [vmem:[%s1867_s2 + $0xc0] ss:$16 sps:$4 sm:$0xff]   ;;  %v1431_v14 = vld [vmem:[%s1867_s2 + $0xc8] ss:$16 sps:$4 sm:$0xff]  }
  0x2d   : > { %v1436_v15 = vld [vmem:[%s1867_s2 + $0xa4] ss:$16 sps:$4 sm:$0xff]   ;;  %v1434_v16 = vld [vmem:[%s1867_s2 + $0xa0] ss:$16 sps:$4 sm:$0xff]   ;;  %v1437_v17 = vld [vmem:[%s1867_s2 + $0xa8] ss:$16 sps:$4 sm:$0xff]  }
  0x2e   : > { %v1442_v18 = vld [vmem:[%s1867_s2 + $0x84] ss:$16 sps:$4 sm:$0xff]   ;;  %v1445_v19 = vld [vmem:[%s1867_s2 + $0x8c] ss:$16 sps:$4 sm:$0xff]   ;;  %v1440_v20 = vld [vmem:[%s1867_s2 + $0x80] ss:$16 sps:$4 sm:$0xff]  }
  0x2f   : > { %443 = vmatpush1.bf16.msra.mxu0 %v1357_v26  ;;  %484 = vmatpush1.bf16.msra.mxu1 %v1370_v32  ;;  %v1443_v21 = vld [vmem:[%s1867_s2 + $0x88] ss:$16 sps:$4 sm:$0xff]   ;;  %v1446_v22 = vld [vmem:[%s1867_s2 + $0x60] ss:$16 sps:$4 sm:$0xff]   ;;  %v1448_v23 = vld [vmem:[%s1867_s2 + $0x64] ss:$16 sps:$4 sm:$0xff]  }
  0x30   : > { %444 = vmatprep.subr.bf16.mxu0 %v1359_v27  ;;  %485 = vmatprep.subr.bf16.mxu1 %v1371_v33  ;;  %v1449_v24 = vld [vmem:[%s1867_s2 + $0x68] ss:$16 sps:$4 sm:$0xff]   ;;  %v1451_v25 = vld [vmem:[%s1867_s2 + $0x6c] ss:$16 sps:$4 sm:$0xff]   ;;  %v1454_v26 = vld [vmem:[%s1867_s2 + $0x44] ss:$16 sps:$4 sm:$0xff]  }
  0x31   : > { %v1457_v27 = vld [vmem:[%s1867_s2 + $0x4c] ss:$16 sps:$4 sm:$0xff]   ;;  %v1452_v28 = vld [vmem:[%s1867_s2 + $0x40] ss:$16 sps:$4 sm:$0xff]   ;;  %v1455_v29 = vld [vmem:[%s1867_s2 + $0x48] ss:$16 sps:$4 sm:$0xff]  }
  0x32   : > { %v1463_v31 = vld [vmem:[%s1867_s2 + $0x2c] ss:$16 sps:$4 sm:$0xff]   ;;  %v1458_v32 = vld [vmem:[%s1867_s2 + $0x20] ss:$16 sps:$4 sm:$0xff]   ;;  %v1461_v33 = vld [vmem:[%s1867_s2 + $0x28] ss:$16 sps:$4 sm:$0xff]  }
  0x33   : > { %445 = vmatpush1.bf16.msra.mxu0 %v1363_v30  ;;  %486 = vmatpush1.bf16.msra.mxu1 %v1373_v37  ;;  %v1460_v30 = vld [vmem:[%s1867_s2 + $0x24] ss:$16 sps:$4 sm:$0xff]   ;;  %v1467_v37 = vld [vmem:[%s1867_s2 + $0x8] ss:$16 sps:$4 sm:$0xff]  }
  0x34   : > { %770 = vmatprep.subr.bf16.mxu0 %v1376_v34  ;;  %811 = vmatprep.subr.bf16.mxu1 %v1382_v39  ;;  %v1466_v34 = vld [vmem:[%s1867_s2 + $0x4] ss:$16 sps:$4 sm:$0xff]  }
  0x36   : > { %463 = vmatmul.mubr.bf16.vlgmr.msra.gmra.mxu0 %v237_v36  ;;  %504 = vmatmul.mubr.bf16.vlgmr.msra.gmra.mxu1 %v237_v36  ;;  %v1464_v36 = vld [vmem:[%s1867_s2] ss:$16 sps:$4 sm:$0xff]  }
  0x37   : > { %771 = vmatpush1.bf16.msra.mxu0 %v1374_v35  ;;  %802 = vmatprep.mubr.bf16.mxu0 %v1511_v3  ;;  %v1469_v35 = vld [vmem:[%s1867_s2 + $0xc] ss:$16 sps:$4 sm:$0xff]  }
  0x38   : > { %772 = vmatprep.subr.bf16.mxu0 %v1379_v38  ;;  %812 = vmatpush1.bf16.msra.mxu1 %v1380_v41  ;;  %v232_v38 = vld [vmem:[%s1553_s25] sm:$0xff] }
  0x39   : > { %813 = vmatprep.subr.bf16.mxu1 %v1388_v43  ;;  %843 = vmatprep.mubr.bf16.mxu1 %v1511_v3 }
  0x3b   : > { %773 = vmatpush1.bf16.msra.mxu0 %v1377_v40  ;;  %v233_v40 = vld [vmem:[%s1553_s25 + $0x8] sm:$0xff] }
  0x3c   : > { %774 = vmatprep.subr.bf16.mxu0 %v1385_v42  ;;  %814 = vmatpush1.bf16.msra.mxu1 %v1386_v45 }
  0x3d   : > { %815 = vmatprep.subr.bf16.mxu1 %v1394_v48 }
  0x3f   : > { %775 = vmatpush1.bf16.msra.mxu0 %v1383_v44 }
  0x40   : > { %776 = vmatprep.subr.bf16.mxu0 %v1391_v46  ;;  %816 = vmatpush1.bf16.msra.mxu1 %v1392_v49 }
  0x41   : > { %817 = vmatprep.subr.bf16.mxu1 %v1400_v52 }
  0x43   : > { %777 = vmatpush1.bf16.msra.mxu0 %v1389_v47 }
  0x44   : > { %778 = vmatprep.subr.bf16.mxu0 %v1397_v50  ;;  %818 = vmatpush1.bf16.msra.mxu1 %v1398_v53  ;;  %v235_v50 = vld [vmem:[%s1553_s25 + $0x18] sm:$0xff]  ;;  %v234_v53 = vld [vmem:[%s1553_s25 + $0x10] sm:$0xff] }
  0x45   : > { %819 = vmatprep.subr.bf16.mxu1 %v1406_v56 }
  0x47   : > { %779 = vmatpush1.bf16.msra.mxu0 %v1395_v51 }
  0x48   : > { %780 = vmatprep.subr.bf16.mxu0 %v1403_v54  ;;  %820 = vmatpush1.bf16.msra.mxu1 %v1404_v57 }
  0x49   : > { %821 = vmatprep.subr.bf16.mxu1 %v1412_v60 }
  0x4b   : > { %781 = vmatpush1.bf16.msra.mxu0 %v1401_v55 }
  0x4c   : > { %782 = vmatprep.subr.bf16.mxu0 %v1409_v58  ;;  %822 = vmatpush1.bf16.msra.mxu1 %v1410_v61 }
  0x4d   : > { %823 = vmatprep.subr.bf16.mxu1 %v1418_v0  ;;  %v516_v0 = vld [vmem:[#allocation3] sm:$0xff] }
  0x4f   : > { %783 = vmatpush1.bf16.msra.mxu0 %v1407_v59 }
  0x50   : > { %784 = vmatprep.subr.bf16.mxu0 %v1415_v62  ;;  %824 = vmatpush1.bf16.msra.mxu1 %v1416_v1 }
  0x51   : > { %825 = vmatprep.subr.bf16.mxu1 %v1421_v5 }
  0x53   : > { %785 = vmatpush1.bf16.msra.mxu0 %v1413_v63 }
  0x54   : > { %826 = vmatpush1.bf16.msra.mxu1 %v1419_v6  ;;  %1012 = vmatprep.subr.bf16.mxu0 %v1424_v7 }
  0x55   : > { %1053 = vmatprep.subr.bf16.mxu1 %v1427_v8 }
  0x56   : > { %803 = vmatmul.mubr.bf16.vlgmr.msra.gmra.mxu0 %v577_v4 }
  0x57   : > { %1044 = vmatprep.mubr.bf16.mxu0 %v1511_v3  ;;  %844 = vmatmul.mubr.bf16.vlgmr.msra.gmra.mxu1 %v577_v4 }
  0x58   : > { %1013 = vmatpush1.bf16.msra.mxu0 %v1422_v9  ;;  %1054 = vmatpush1.bf16.msra.mxu1 %v1425_v10 }
  0x59   : > { %1085 = vmatprep.mubr.bf16.mxu1 %v1511_v3  ;;  %1014 = vmatprep.subr.bf16.mxu0 %v1430_v11  ;;  %v1439_v3 = vld [vmem:[%s1867_s2 + $0xac] ss:$16 sps:$4 sm:$0xff]  }
  0x5a   : > { %1055 = vmatprep.subr.bf16.mxu1 %v1433_v12 }
  0x5c   : > { %1015 = vmatpush1.bf16.msra.mxu0 %v1428_v13  ;;  %1056 = vmatpush1.bf16.msra.mxu1 %v1431_v14 }
  0x5d   : > { %1016 = vmatprep.subr.bf16.mxu0 %v1436_v15  ;;  %1057 = vmatprep.subr.bf16.mxu1 %v1439_v3 }
  0x60   : > { %1017 = vmatpush1.bf16.msra.mxu0 %v1434_v16  ;;  %1058 = vmatpush1.bf16.msra.mxu1 %v1437_v17 }
  0x61   : > { %1018 = vmatprep.subr.bf16.mxu0 %v1442_v18  ;;  %1059 = vmatprep.subr.bf16.mxu1 %v1445_v19  ;;  %v1096_v18 = vlaneseq }
  0x63   : > { %v1097_v19 = vshrl.u32 %v1096_v18, 7 }
  0x64   : > { %1019 = vmatpush1.bf16.msra.mxu0 %v1440_v20  ;;  %1060 = vmatpush1.bf16.msra.mxu1 %v1443_v21  ;;  %v1094_v21 = vld [vmem:[%s1869_s4] sm:$0xf] }
  0x65   : > { %1020 = vmatprep.subr.bf16.mxu0 %v1448_v23  ;;  %1061 = vmatprep.subr.bf16.mxu1 %v1451_v25  ;;  %v1098_v20 = vsub.s32 0, %v1097_v19 }
  0x67   : > { %v1099_v23 = vrot.slane %v1094_v21, %v1098_v20 }
  0x68   : > { %1021 = vmatpush1.bf16.msra.mxu0 %v1446_v22  ;;  %1062 = vmatpush1.bf16.msra.mxu1 %v1449_v24  ;;  %v1102_v22 = vsub.s32 1, %v1097_v19 }
  0x69   : > { %1022 = vmatprep.subr.bf16.mxu0 %v1454_v26  ;;  %1063 = vmatprep.subr.bf16.mxu1 %v1457_v27 }
  0x6a   : > { %v1103_v27 = vrot.slane %v1094_v21, %v1102_v22 }
  0x6c   : > { %1023 = vmatpush1.bf16.msra.mxu0 %v1452_v28  ;;  %1064 = vmatpush1.bf16.msra.mxu1 %v1455_v29 }
  0x6d   : > { %1024 = vmatprep.subr.bf16.mxu0 %v1460_v30  ;;  %1065 = vmatprep.subr.bf16.mxu1 %v1463_v31 }
  0x70   : > { %1025 = vmatpush1.bf16.msra.mxu0 %v1458_v32  ;;  %1066 = vmatpush1.bf16.msra.mxu1 %v1461_v33 }
  0x71   : > { %1026 = vmatprep.subr.bf16.mxu0 %v1466_v34  ;;  %1067 = vmatprep.subr.bf16.mxu1 %v1469_v35 }
  0x74   : > { %1027 = vmatpush1.bf16.msra.mxu0 %v1464_v36  ;;  %1068 = vmatpush1.bf16.msra.mxu1 %v1467_v37  ;;  %v1110_v36 = vsub.s32 3, %v1097_v19 }
  0xf6   : > { %v464_v39 = vpop.f32.mrf.mxu0  ;;  %v505_v47 = vpop.f32.mrf.mxu1 }
  0xf7   : > { %v512_v41 = vadd.f32 %v464_v39, %v232_v38  ;;  %v514_v55 = vadd.f32 %v505_v47, %v234_v53 }
  0xf8   : > { %v466_v42 = vpop.f32.mrf.mxu0  ;;  %v507_v49 = vpop.f32.mrf.mxu1 }
  0xf9   : > { %v1243_v43 = vmul.f32 -1.442695, %v512_v41  ;;  %v513_v44 = vadd.f32 %v466_v42, %v233_v40  ;;  %v515_v54 = vadd.f32 %v507_v49, %v235_v50  ;;  %v1111_v41 = vrot.slane %v1094_v21, %v1110_v36 }
  0xfa   : > { %v468_v45 = vpop.f32.mrf.mxu0  ;;  %v509_v51 = vpop.f32.mrf.mxu1  ;;  %v1106_v42 = vsub.s32 2, %v1097_v19 }
  0xfb   : > { %1470 = vpow2.f32 %v1243_v43  ;;  %v1244_v46 = vmul.f32 -1.442695, %v513_v44  ;;  %v1245_v56 = vmul.f32 -1.442695, %v515_v54  ;;  %v1120_v54 = vld [vmem:[#allocation5] sm:$0xff] }
  0xfc   : > { %v469_v48 = vpop.f32.mrf.mxu0  ;;  %v510_v52 = vpop.f32.mrf.mxu1  ;;  %v1107_v45 = vrot.slane %v1094_v21, %v1106_v42 }
  0xfd   : > { %1472 = vpow2.f32 %v1244_v46 }
  0xfe   : > { %1474 = vtanh.f32 %v514_v55 }
  0xff   : > { %1476 = vpow2.f32 %v1245_v56 }
 0x108   : > { %v1471_v57 = vpop.eup %1470 }
 0x109   : > { %v520_v58 = vadd.f32 1.0, %v1471_v57 }
 0x10a   : > { %v1473_v59 = vpop.eup %1472 }
 0x10b   : > { %1478 = vrcp.f32 %v520_v58  ;;  %v526_v60 = vadd.f32 1.0, %v1473_v59  ;;  %v1475_v61 = vpop.eup %1474 }
 0x10c   : > { %v1477_v62 = vpop.eup %1476 }
 0x10d   : > { %1480 = vrcp.f32 %v526_v60  ;;  %v533_v2 = vadd.f32 1.0, %v1477_v62 }
 0x10f   : > { %1482 = vrcp.f32 %v533_v2 }
 0x116   : > { %v804_v11 = vpop.f32.mrf.mxu0 }
 0x117   : > { %v845_v15 = vpop.f32.mrf.mxu1 }
 0x118   : > { %v1479_v63 = vpop.eup %1478  ;;  %v806_v12 = vpop.f32.mrf.mxu0 }
 0x119   : > { %v537_v5 = vmul.f32 %v1479_v63, %v1475_v61  ;;  %v847_v3 = vpop.f32.mrf.mxu1 }
 0x11a   : > { %v1481_v1 = vpop.eup %1480  ;;  %v808_v13 = vpop.f32.mrf.mxu0 }
 0x11b   : > { %v536_v4 = vmul.f32 %v1481_v1, %v516_v0  ;;  %v849_v16 = vpop.f32.mrf.mxu1 }
 0x11c   : > { %v1483_v7 = vpop.eup %1482  ;;  %v809_v14 = vpop.f32.mrf.mxu0 }
 0x11d   : > { %v538_v6 = vadd.f32 %v537_v5, %v536_v4  ;;  %v850_v17 = vpop.f32.mrf.mxu1 }
 0x11f   : > { %1484 = vtanh.f32 %v538_v6  ;;  %542 = vst [vmem:[#allocation3] sm:$0xff] %v538_v6 }
 0x12c   : > { %v1485_v8 = vpop.eup %1484 }
 0x12d   : > { %v540_v9 = vmul.f32 %v1485_v8, %v1483_v7 }
 0x12f   : > { %541 = vst [vmem:[#allocation2] sm:$0xff] %v540_v9  ;;  %v543_v10 = vpack.c.bf16 %v540_v9, %v540_v9 }
 0x131   : > { %1045 = vmatmul.mubr.bf16.vlgmr.msra.gmra.mxu0 %v543_v10  ;;  %1086 = vmatmul.mubr.bf16.vlgmr.msra.gmra.mxu1 %v543_v10 }
 0x1f1   : > { %v1046_v24 = vpop.f32.mrf.mxu0  ;;  %v1087_v25 = vpop.f32.mrf.mxu1 }
 0x1f2   : > { %v1047_v26 = vadd.f32 %v1046_v24, %v804_v11  ;;  %v1088_v44 = vadd.f32 %v1087_v25, %v845_v15 }
 0x1f3   : > { %v1048_v28 = vpop.f32.mrf.mxu0  ;;  %v1089_v29 = vpop.f32.mrf.mxu1 }
 0x1f4   : > { %v1116_v30 = vadd.f32 %v1099_v23, %v1047_v26  ;;  %v1049_v31 = vadd.f32 %v1048_v28, %v806_v12  ;;  %v1090_v40 = vadd.f32 %v1089_v29, %v847_v3  ;;  %v1118_v48 = vadd.f32 %v1107_v45, %v1088_v44 }
 0x1f5   : > { %v1050_v32 = vpop.f32.mrf.mxu0  ;;  %v1091_v33 = vpop.f32.mrf.mxu1 }
 0x1f6   : > { %v1310_v34 = vmul.f32 -1.442695, %v1116_v30  ;;  %v1117_v35 = vadd.f32 %v1103_v27, %v1049_v31  ;;  %v1119_v43 = vadd.f32 %v1111_v41, %v1090_v40 }
 0x1f7   : > { %v1051_v37 = vpop.f32.mrf.mxu0  ;;  %v1092_v38 = vpop.f32.mrf.mxu1 }
 0x1f8   : > { %1486 = vpow2.f32 %v1310_v34  ;;  %v1311_v39 = vmul.f32 -1.442695, %v1117_v35  ;;  %v1312_v46 = vmul.f32 -1.442695, %v1119_v43 }
 0x1fa   : > { %1488 = vpow2.f32 %v1311_v39 }
 0x1fb   : > { %1490 = vpow2.f32 %v1312_v46 }
 0x205   : > { %v1487_v47 = vpop.eup %1486 }
 0x206   : > { %v1124_v49 = vadd.f32 1.0, %v1487_v47 }
 0x207   : > { %v1489_v50 = vpop.eup %1488 }
 0x208   : > { %1492 = vrcp.f32 %v1124_v49  ;;  %v1130_v51 = vadd.f32 1.0, %v1489_v50  ;;  %v1491_v52 = vpop.eup %1490 }
 0x209   : > { %1494 = vtanh.f32 %v1118_v48  ;;  %v1137_v57 = vadd.f32 1.0, %v1491_v52 }
 0x20a   : > { %1496 = vrcp.f32 %v1130_v51 }
 0x20b   : > { %1498 = vrcp.f32 %v1137_v57 }
 0x215   : > { %v1493_v53 = vpop.eup %1492 }
 0x216   : > { %v1495_v55 = vpop.eup %1494 }
 0x217   : > { %v1497_v56 = vpop.eup %1496  ;;  %v1141_v58 = vmul.f32 %v1495_v55, %v1493_v53 }
 0x218   : > { %v1140_v59 = vmul.f32 %v1497_v56, %v1120_v54  ;;  %v1499_v61 = vpop.eup %1498 }
 0x21a   : > { %v1142_v60 = vadd.f32 %v1141_v58, %v1140_v59 }
 0x21c   : > { %1500 = vtanh.f32 %v1142_v60  ;;  %1146 = vst [vmem:[#allocation5] sm:$0xff] %v1142_v60 }
 0x229   : > { %v1501_v62 = vpop.eup %1500 }
 0x22a   : > { %v1144_v63 = vmul.f32 %v1501_v62, %v1499_v61 }
 0x22c   : > { %1145 = vst [vmem:[#allocation4] sm:$0xff] %v1144_v63  ;;  %v1147_v0 = vpack.c.bf16 %v1144_v63, %v1144_v63 }
 0x22e   : > { %1148 = vst [vmem:[%s1558_s28] sm:$0xf] %v1147_v0 }
 0x22f PF: > { %s15_s18 = sadd.s32 1, %s1508_s18  }
 0x230   : > { %p12_p5 = scmp.ge.s32.totalorder %s15_s18, 11  }
 0x232   :  { %14 = sbr.rel (!%p12_p5) target bundleno = 1 (0x1), region = 74 }

</bundles_post_ra>
